<compile_context>
chip_gen: v5e
topology: v5e:2x2
jax: 0.10.0
libtpu: 0.0.40
codegen_flags: <defaults>
</compile_context>

<pallas_src>
import functools

import jax
import jax.numpy as jnp
from jax import lax
from jax.experimental import pallas as pl
from jax.experimental.pallas import tpu as pltpu


def embedding_dist_kernel(idx_i_ref, idx_j_ref, beta_ref, emb_hbm_ref,
                          out_ref, zi_buf, zj_buf, copy_sems):
    t = pl.program_id(0)
    TB, D = zi_buf.shape
    base = t * TB

    # Gather the 2*TB embedding rows for this batch tile straight from HBM.
    # Issue every row DMA first, then wait, so all copies are in flight at once.
    copies = []
    for b in range(TB):
        row_i = idx_i_ref[base + b]
        row_j = idx_j_ref[base + b]
        ci = pltpu.make_async_copy(emb_hbm_ref.at[row_i], zi_buf.at[b],
                                   copy_sems.at[0, b])
        cj = pltpu.make_async_copy(emb_hbm_ref.at[row_j], zj_buf.at[b],
                                   copy_sems.at[1, b])
        ci.start()
        cj.start()
        copies.append(ci)
        copies.append(cj)
    for c in copies:
        c.wait()

    diff = zi_buf[...] - zj_buf[...]          # (TB, D)   VPU
    sq = diff * diff                          # (TB, D)   VPU

    # Row-sum over D on the MXU: (1, D) . (TB, D)^T -> (1, TB).
    # Produces the per-pair squared distance already in lane-dense layout.
    ones = jnp.ones((1, D), jnp.float32)
    sq_sum = lax.dot_general(
        ones, sq,
        dimension_numbers=(((1,), (1,)), ((), ())),
        precision=lax.Precision.HIGHEST,
        preferred_element_type=jnp.float32)   # (1, TB)

    out_ref[...] = beta_ref[0] - jnp.sqrt(sq_sum)   # lane-dense (1, TB) store


@functools.partial(jax.jit, static_argnames=("batch_tile",))
def embedding_model_forward(node_i, node_j, embeddings, beta, *, batch_tile=None):
    """node_i, node_j: (B,) int; embeddings: (N, D) f32; beta: scalar. -> (B,) f32."""
    B = node_i.shape[0]
    N, D = embeddings.shape

    TB = B if batch_tile is None else batch_tile
    if B % TB != 0:
        raise ValueError(f"batch {B} must be divisible by batch_tile {TB}")
    grid = (B // TB,)

    idx_i = node_i.astype(jnp.int32)
    idx_j = node_j.astype(jnp.int32)
    beta_arr = jnp.asarray(beta, jnp.float32).reshape(1)
    embeddings = embeddings.astype(jnp.float32)

    cost = pl.CostEstimate(
        flops=B * (5 * D + 2),                 # diff, square, row-sum, epilogue
        transcendentals=B,                     # sqrt
        bytes_accessed=2 * B * D * 4 + 2 * B * 4 + B * 4 + 4)

    out = pl.pallas_call(
        embedding_dist_kernel,
        out_shape=jax.ShapeDtypeStruct((1, B), jnp.float32),
        grid=grid,
        in_specs=[
            pl.BlockSpec(memory_space=pltpu.MemorySpace.SMEM),   # node_i (B,) int32
            pl.BlockSpec(memory_space=pltpu.MemorySpace.SMEM),   # node_j (B,) int32
            pl.BlockSpec(memory_space=pltpu.MemorySpace.SMEM),   # beta   (1,) f32
            pl.BlockSpec(memory_space=pl.ANY),                   # table  (N,D) stays in HBM
        ],
        out_specs=pl.BlockSpec((1, TB), lambda t: (0, t)),
        scratch_shapes=[
            pltpu.VMEM((TB, D), jnp.float32),      # gathered z_i rows
            pltpu.VMEM((TB, D), jnp.float32),      # gathered z_j rows
            pltpu.SemaphoreType.DMA((2, TB)),      # one semaphore per row DMA
        ],
        compiler_params=pltpu.CompilerParams(
            dimension_semantics=("parallel",)),
        cost_estimate=cost,
    )(idx_i, idx_j, beta_arr, embeddings)

    return out[0, :]


if __name__ == "__main__":
    num_nodes = 32
    embedding_dim = 32
    batch = 8

    key = jax.random.PRNGKey(0)
    k_emb, k_i, k_j = jax.random.split(key, 3)

    # Deterministic init matching torch.normal(0, 1, (num_nodes, dim)).
    embeddings = jax.random.normal(k_emb, (num_nodes, embedding_dim), dtype=jnp.float32)
    beta = jnp.float32(0.0)   # nn.Parameter(torch.tensor(0.0))

    node_i = jax.random.randint(k_i, (batch,), 0, num_nodes, dtype=jnp.int32)
    node_j = jax.random.randint(k_j, (batch,), 0, num_nodes, dtype=jnp.int32)

    out = embedding_model_forward(node_i, node_j, embeddings, beta)
    out = jax.block_until_ready(out)

    # Pure-JAX reference check.
    z_i = embeddings[node_i]
    z_j = embeddings[node_j]
    ref = beta - jnp.linalg.norm(z_i - z_j, axis=-1)
    assert out.shape == (batch,), out.shape
    assert jnp.allclose(out, ref, atol=1e-5, rtol=1e-5), (out, ref)

    print("KERNEL_OK")
</pallas_src>

<mosaic_0001>
module attributes {stable_mosaic.version = 11 : i64} {
  func.func @embedding_dist_kernel(%arg0: i32, %arg1: memref<8xi32, #tpu.memory_space<smem>>, %arg2: memref<8xi32, #tpu.memory_space<smem>>, %arg3: memref<1xf32, #tpu.memory_space<smem>>, %arg4: memref<32x32xf32, #tpu.memory_space<any>>, %arg5: memref<1x8xf32, #tpu.memory_space<vmem>>, %arg6: memref<8x32xf32, #tpu.memory_space<vmem>>, %arg7: memref<8x32xf32, #tpu.memory_space<vmem>>, %arg8: memref<2x8x!tpu.dma_semaphore, #tpu.memory_space<semaphore_mem>>) attributes {dimension_semantics = [#tpu.dimension_semantics<parallel>], iteration_bounds = array<i64: 1>, scalar_prefetch = 0 : i64, scratch_operands = 3 : i64, tpu.core_type = #tpu.core_type<tc>, window_params = [{transform_indices = @transform_0, window_bounds = array<i64: 8>}, {transform_indices = @transform_1, window_bounds = array<i64: 8>}, {transform_indices = @transform_2, window_bounds = array<i64: 1>}, {}, {transform_indices = @transform_4, window_bounds = array<i64: 1, 8>}]} {
    %c8_i32 = arith.constant 8 : i32
    %0 = arith.muli %arg0, %c8_i32 : i32
    %c0_i32 = arith.constant 0 : i32
    %1 = arith.addi %0, %c0_i32 : i32
    %2 = arith.index_cast %1 : i32 to index
    %3 = memref.load %arg1[%2] : memref<8xi32, #tpu.memory_space<smem>>
    %c0_i32_0 = arith.constant 0 : i32
    %4 = arith.addi %0, %c0_i32_0 : i32
    %5 = arith.index_cast %4 : i32 to index
    %6 = memref.load %arg2[%5] : memref<8xi32, #tpu.memory_space<smem>>
    %c0_i32_1 = arith.constant 0 : i32
    %c0_i32_2 = arith.constant 0 : i32
    %c0_i32_3 = arith.constant 0 : i32
    %c0_i32_4 = arith.constant 0 : i32
    %7 = tpu.memref_slice %arg4[%3, %c0_i32_4] : memref<32x32xf32, #tpu.memory_space<any>> -> memref<1x32xf32, #tpu.memory_space<any>>
    %8 = tpu.memref_squeeze %7 : memref<1x32xf32, #tpu.memory_space<any>> -> memref<32xf32, #tpu.memory_space<any>>
    %c0_i32_5 = arith.constant 0 : i32
    %9 = tpu.memref_slice %arg6[%c0_i32_1, %c0_i32_5] : memref<8x32xf32, #tpu.memory_space<vmem>> -> memref<1x32xf32, #tpu.memory_space<vmem>>
    %10 = tpu.memref_squeeze %9 : memref<1x32xf32, #tpu.memory_space<vmem>> -> memref<32xf32, #tpu.memory_space<vmem>>
    %11 = tpu.memref_slice %arg8[%c0_i32_2, %c0_i32_3] : memref<2x8x!tpu.dma_semaphore, #tpu.memory_space<semaphore_mem>> -> memref<1x1x!tpu.dma_semaphore, #tpu.memory_space<semaphore_mem>>
    %12 = tpu.memref_squeeze %11 : memref<1x1x!tpu.dma_semaphore, #tpu.memory_space<semaphore_mem>> -> memref<!tpu.dma_semaphore, #tpu.memory_space<semaphore_mem>>
    tpu.enqueue_dma source(%8 : memref<32xf32, #tpu.memory_space<any>>) target(%10 : memref<32xf32, #tpu.memory_space<vmem>>) target_semaphore(%12 : memref<!tpu.dma_semaphore, #tpu.memory_space<semaphore_mem>>)
    %c0_i32_6 = arith.constant 0 : i32
    %c1_i32 = arith.constant 1 : i32
    %c0_i32_7 = arith.constant 0 : i32
    %c0_i32_8 = arith.constant 0 : i32
    %13 = tpu.memref_slice %arg4[%6, %c0_i32_8] : memref<32x32xf32, #tpu.memory_space<any>> -> memref<1x32xf32, #tpu.memory_space<any>>
    %14 = tpu.memref_squeeze %13 : memref<1x32xf32, #tpu.memory_space<any>> -> memref<32xf32, #tpu.memory_space<any>>
    %c0_i32_9 = arith.constant 0 : i32
    %15 = tpu.memref_slice %arg7[%c0_i32_6, %c0_i32_9] : memref<8x32xf32, #tpu.memory_space<vmem>> -> memref<1x32xf32, #tpu.memory_space<vmem>>
    %16 = tpu.memref_squeeze %15 : memref<1x32xf32, #tpu.memory_space<vmem>> -> memref<32xf32, #tpu.memory_space<vmem>>
    %17 = tpu.memref_slice %arg8[%c1_i32, %c0_i32_7] : memref<2x8x!tpu.dma_semaphore, #tpu.memory_space<semaphore_mem>> -> memref<1x1x!tpu.dma_semaphore, #tpu.memory_space<semaphore_mem>>
    %18 = tpu.memref_squeeze %17 : memref<1x1x!tpu.dma_semaphore, #tpu.memory_space<semaphore_mem>> -> memref<!tpu.dma_semaphore, #tpu.memory_space<semaphore_mem>>
    tpu.enqueue_dma source(%14 : memref<32xf32, #tpu.memory_space<any>>) target(%16 : memref<32xf32, #tpu.memory_space<vmem>>) target_semaphore(%18 : memref<!tpu.dma_semaphore, #tpu.memory_space<semaphore_mem>>)
    %c1_i32_10 = arith.constant 1 : i32
    %19 = arith.addi %0, %c1_i32_10 : i32
    %20 = arith.index_cast %19 : i32 to index
    %21 = memref.load %arg1[%20] : memref<8xi32, #tpu.memory_space<smem>>
    %c1_i32_11 = arith.constant 1 : i32
    %22 = arith.addi %0, %c1_i32_11 : i32
    %23 = arith.index_cast %22 : i32 to index
    %24 = memref.load %arg2[%23] : memref<8xi32, #tpu.memory_space<smem>>
    %c1_i32_12 = arith.constant 1 : i32
    %c0_i32_13 = arith.constant 0 : i32
    %c1_i32_14 = arith.constant 1 : i32
    %c0_i32_15 = arith.constant 0 : i32
    %25 = tpu.memref_slice %arg4[%21, %c0_i32_15] : memref<32x32xf32, #tpu.memory_space<any>> -> memref<1x32xf32, #tpu.memory_space<any>>
    %26 = tpu.memref_squeeze %25 : memref<1x32xf32, #tpu.memory_space<any>> -> memref<32xf32, #tpu.memory_space<any>>
    %c0_i32_16 = arith.constant 0 : i32
    %27 = tpu.memref_slice %arg6[%c1_i32_12, %c0_i32_16] : memref<8x32xf32, #tpu.memory_space<vmem>> -> memref<1x32xf32, #tpu.memory_space<vmem>>
    %28 = tpu.memref_squeeze %27 : memref<1x32xf32, #tpu.memory_space<vmem>> -> memref<32xf32, #tpu.memory_space<vmem>>
    %29 = tpu.memref_slice %arg8[%c0_i32_13, %c1_i32_14] : memref<2x8x!tpu.dma_semaphore, #tpu.memory_space<semaphore_mem>> -> memref<1x1x!tpu.dma_semaphore, #tpu.memory_space<semaphore_mem>>
    %30 = tpu.memref_squeeze %29 : memref<1x1x!tpu.dma_semaphore, #tpu.memory_space<semaphore_mem>> -> memref<!tpu.dma_semaphore, #tpu.memory_space<semaphore_mem>>
    tpu.enqueue_dma source(%26 : memref<32xf32, #tpu.memory_space<any>>) target(%28 : memref<32xf32, #tpu.memory_space<vmem>>) target_semaphore(%30 : memref<!tpu.dma_semaphore, #tpu.memory_space<semaphore_mem>>)
    %c1_i32_17 = arith.constant 1 : i32
    %c1_i32_18 = arith.constant 1 : i32
    %c1_i32_19 = arith.constant 1 : i32
    %c0_i32_20 = arith.constant 0 : i32
    %31 = tpu.memref_slice %arg4[%24, %c0_i32_20] : memref<32x32xf32, #tpu.memory_space<any>> -> memref<1x32xf32, #tpu.memory_space<any>>
    %32 = tpu.memref_squeeze %31 : memref<1x32xf32, #tpu.memory_space<any>> -> memref<32xf32, #tpu.memory_space<any>>
    %c0_i32_21 = arith.constant 0 : i32
    %33 = tpu.memref_slice %arg7[%c1_i32_17, %c0_i32_21] : memref<8x32xf32, #tpu.memory_space<vmem>> -> memref<1x32xf32, #tpu.memory_space<vmem>>
    %34 = tpu.memref_squeeze %33 : memref<1x32xf32, #tpu.memory_space<vmem>> -> memref<32xf32, #tpu.memory_space<vmem>>
    %35 = tpu.memref_slice %arg8[%c1_i32_18, %c1_i32_19] : memref<2x8x!tpu.dma_semaphore, #tpu.memory_space<semaphore_mem>> -> memref<1x1x!tpu.dma_semaphore, #tpu.memory_space<semaphore_mem>>
    %36 = tpu.memref_squeeze %35 : memref<1x1x!tpu.dma_semaphore, #tpu.memory_space<semaphore_mem>> -> memref<!tpu.dma_semaphore, #tpu.memory_space<semaphore_mem>>
    tpu.enqueue_dma source(%32 : memref<32xf32, #tpu.memory_space<any>>) target(%34 : memref<32xf32, #tpu.memory_space<vmem>>) target_semaphore(%36 : memref<!tpu.dma_semaphore, #tpu.memory_space<semaphore_mem>>)
    %c2_i32 = arith.constant 2 : i32
    %37 = arith.addi %0, %c2_i32 : i32
    %38 = arith.index_cast %37 : i32 to index
    %39 = memref.load %arg1[%38] : memref<8xi32, #tpu.memory_space<smem>>
    %c2_i32_22 = arith.constant 2 : i32
    %40 = arith.addi %0, %c2_i32_22 : i32
    %41 = arith.index_cast %40 : i32 to index
    %42 = memref.load %arg2[%41] : memref<8xi32, #tpu.memory_space<smem>>
    %c2_i32_23 = arith.constant 2 : i32
    %c0_i32_24 = arith.constant 0 : i32
    %c2_i32_25 = arith.constant 2 : i32
    %c0_i32_26 = arith.constant 0 : i32
    %43 = tpu.memref_slice %arg4[%39, %c0_i32_26] : memref<32x32xf32, #tpu.memory_space<any>> -> memref<1x32xf32, #tpu.memory_space<any>>
    %44 = tpu.memref_squeeze %43 : memref<1x32xf32, #tpu.memory_space<any>> -> memref<32xf32, #tpu.memory_space<any>>
    %c0_i32_27 = arith.constant 0 : i32
    %45 = tpu.memref_slice %arg6[%c2_i32_23, %c0_i32_27] : memref<8x32xf32, #tpu.memory_space<vmem>> -> memref<1x32xf32, #tpu.memory_space<vmem>>
    %46 = tpu.memref_squeeze %45 : memref<1x32xf32, #tpu.memory_space<vmem>> -> memref<32xf32, #tpu.memory_space<vmem>>
    %47 = tpu.memref_slice %arg8[%c0_i32_24, %c2_i32_25] : memref<2x8x!tpu.dma_semaphore, #tpu.memory_space<semaphore_mem>> -> memref<1x1x!tpu.dma_semaphore, #tpu.memory_space<semaphore_mem>>
    %48 = tpu.memref_squeeze %47 : memref<1x1x!tpu.dma_semaphore, #tpu.memory_space<semaphore_mem>> -> memref<!tpu.dma_semaphore, #tpu.memory_space<semaphore_mem>>
    tpu.enqueue_dma source(%44 : memref<32xf32, #tpu.memory_space<any>>) target(%46 : memref<32xf32, #tpu.memory_space<vmem>>) target_semaphore(%48 : memref<!tpu.dma_semaphore, #tpu.memory_space<semaphore_mem>>)
    %c2_i32_28 = arith.constant 2 : i32
    %c1_i32_29 = arith.constant 1 : i32
    %c2_i32_30 = arith.constant 2 : i32
    %c0_i32_31 = arith.constant 0 : i32
    %49 = tpu.memref_slice %arg4[%42, %c0_i32_31] : memref<32x32xf32, #tpu.memory_space<any>> -> memref<1x32xf32, #tpu.memory_space<any>>
    %50 = tpu.memref_squeeze %49 : memref<1x32xf32, #tpu.memory_space<any>> -> memref<32xf32, #tpu.memory_space<any>>
    %c0_i32_32 = arith.constant 0 : i32
    %51 = tpu.memref_slice %arg7[%c2_i32_28, %c0_i32_32] : memref<8x32xf32, #tpu.memory_space<vmem>> -> memref<1x32xf32, #tpu.memory_space<vmem>>
    %52 = tpu.memref_squeeze %51 : memref<1x32xf32, #tpu.memory_space<vmem>> -> memref<32xf32, #tpu.memory_space<vmem>>
    %53 = tpu.memref_slice %arg8[%c1_i32_29, %c2_i32_30] : memref<2x8x!tpu.dma_semaphore, #tpu.memory_space<semaphore_mem>> -> memref<1x1x!tpu.dma_semaphore, #tpu.memory_space<semaphore_mem>>
    %54 = tpu.memref_squeeze %53 : memref<1x1x!tpu.dma_semaphore, #tpu.memory_space<semaphore_mem>> -> memref<!tpu.dma_semaphore, #tpu.memory_space<semaphore_mem>>
    tpu.enqueue_dma source(%50 : memref<32xf32, #tpu.memory_space<any>>) target(%52 : memref<32xf32, #tpu.memory_space<vmem>>) target_semaphore(%54 : memref<!tpu.dma_semaphore, #tpu.memory_space<semaphore_mem>>)
    %c3_i32 = arith.constant 3 : i32
    %55 = arith.addi %0, %c3_i32 : i32
    %56 = arith.index_cast %55 : i32 to index
    %57 = memref.load %arg1[%56] : memref<8xi32, #tpu.memory_space<smem>>
    %c3_i32_33 = arith.constant 3 : i32
    %58 = arith.addi %0, %c3_i32_33 : i32
    %59 = arith.index_cast %58 : i32 to index
    %60 = memref.load %arg2[%59] : memref<8xi32, #tpu.memory_space<smem>>
    %c3_i32_34 = arith.constant 3 : i32
    %c0_i32_35 = arith.constant 0 : i32
    %c3_i32_36 = arith.constant 3 : i32
    %c0_i32_37 = arith.constant 0 : i32
    %61 = tpu.memref_slice %arg4[%57, %c0_i32_37] : memref<32x32xf32, #tpu.memory_space<any>> -> memref<1x32xf32, #tpu.memory_space<any>>
    %62 = tpu.memref_squeeze %61 : memref<1x32xf32, #tpu.memory_space<any>> -> memref<32xf32, #tpu.memory_space<any>>
    %c0_i32_38 = arith.constant 0 : i32
    %63 = tpu.memref_slice %arg6[%c3_i32_34, %c0_i32_38] : memref<8x32xf32, #tpu.memory_space<vmem>> -> memref<1x32xf32, #tpu.memory_space<vmem>>
    %64 = tpu.memref_squeeze %63 : memref<1x32xf32, #tpu.memory_space<vmem>> -> memref<32xf32, #tpu.memory_space<vmem>>
    %65 = tpu.memref_slice %arg8[%c0_i32_35, %c3_i32_36] : memref<2x8x!tpu.dma_semaphore, #tpu.memory_space<semaphore_mem>> -> memref<1x1x!tpu.dma_semaphore, #tpu.memory_space<semaphore_mem>>
    %66 = tpu.memref_squeeze %65 : memref<1x1x!tpu.dma_semaphore, #tpu.memory_space<semaphore_mem>> -> memref<!tpu.dma_semaphore, #tpu.memory_space<semaphore_mem>>
    tpu.enqueue_dma source(%62 : memref<32xf32, #tpu.memory_space<any>>) target(%64 : memref<32xf32, #tpu.memory_space<vmem>>) target_semaphore(%66 : memref<!tpu.dma_semaphore, #tpu.memory_space<semaphore_mem>>)
    %c3_i32_39 = arith.constant 3 : i32
    %c1_i32_40 = arith.constant 1 : i32
    %c3_i32_41 = arith.constant 3 : i32
    %c0_i32_42 = arith.constant 0 : i32
    %67 = tpu.memref_slice %arg4[%60, %c0_i32_42] : memref<32x32xf32, #tpu.memory_space<any>> -> memref<1x32xf32, #tpu.memory_space<any>>
    %68 = tpu.memref_squeeze %67 : memref<1x32xf32, #tpu.memory_space<any>> -> memref<32xf32, #tpu.memory_space<any>>
    %c0_i32_43 = arith.constant 0 : i32
    %69 = tpu.memref_slice %arg7[%c3_i32_39, %c0_i32_43] : memref<8x32xf32, #tpu.memory_space<vmem>> -> memref<1x32xf32, #tpu.memory_space<vmem>>
    %70 = tpu.memref_squeeze %69 : memref<1x32xf32, #tpu.memory_space<vmem>> -> memref<32xf32, #tpu.memory_space<vmem>>
    %71 = tpu.memref_slice %arg8[%c1_i32_40, %c3_i32_41] : memref<2x8x!tpu.dma_semaphore, #tpu.memory_space<semaphore_mem>> -> memref<1x1x!tpu.dma_semaphore, #tpu.memory_space<semaphore_mem>>
    %72 = tpu.memref_squeeze %71 : memref<1x1x!tpu.dma_semaphore, #tpu.memory_space<semaphore_mem>> -> memref<!tpu.dma_semaphore, #tpu.memory_space<semaphore_mem>>
    tpu.enqueue_dma source(%68 : memref<32xf32, #tpu.memory_space<any>>) target(%70 : memref<32xf32, #tpu.memory_space<vmem>>) target_semaphore(%72 : memref<!tpu.dma_semaphore, #tpu.memory_space<semaphore_mem>>)
    %c4_i32 = arith.constant 4 : i32
    %73 = arith.addi %0, %c4_i32 : i32
    %74 = arith.index_cast %73 : i32 to index
    %75 = memref.load %arg1[%74] : memref<8xi32, #tpu.memory_space<smem>>
    %c4_i32_44 = arith.constant 4 : i32
    %76 = arith.addi %0, %c4_i32_44 : i32
    %77 = arith.index_cast %76 : i32 to index
    %78 = memref.load %arg2[%77] : memref<8xi32, #tpu.memory_space<smem>>
    %c4_i32_45 = arith.constant 4 : i32
    %c0_i32_46 = arith.constant 0 : i32
    %c4_i32_47 = arith.constant 4 : i32
    %c0_i32_48 = arith.constant 0 : i32
    %79 = tpu.memref_slice %arg4[%75, %c0_i32_48] : memref<32x32xf32, #tpu.memory_space<any>> -> memref<1x32xf32, #tpu.memory_space<any>>
    %80 = tpu.memref_squeeze %79 : memref<1x32xf32, #tpu.memory_space<any>> -> memref<32xf32, #tpu.memory_space<any>>
    %c0_i32_49 = arith.constant 0 : i32
    %81 = tpu.memref_slice %arg6[%c4_i32_45, %c0_i32_49] : memref<8x32xf32, #tpu.memory_space<vmem>> -> memref<1x32xf32, #tpu.memory_space<vmem>>
    %82 = tpu.memref_squeeze %81 : memref<1x32xf32, #tpu.memory_space<vmem>> -> memref<32xf32, #tpu.memory_space<vmem>>
    %83 = tpu.memref_slice %arg8[%c0_i32_46, %c4_i32_47] : memref<2x8x!tpu.dma_semaphore, #tpu.memory_space<semaphore_mem>> -> memref<1x1x!tpu.dma_semaphore, #tpu.memory_space<semaphore_mem>>
    %84 = tpu.memref_squeeze %83 : memref<1x1x!tpu.dma_semaphore, #tpu.memory_space<semaphore_mem>> -> memref<!tpu.dma_semaphore, #tpu.memory_space<semaphore_mem>>
    tpu.enqueue_dma source(%80 : memref<32xf32, #tpu.memory_space<any>>) target(%82 : memref<32xf32, #tpu.memory_space<vmem>>) target_semaphore(%84 : memref<!tpu.dma_semaphore, #tpu.memory_space<semaphore_mem>>)
    %c4_i32_50 = arith.constant 4 : i32
    %c1_i32_51 = arith.constant 1 : i32
    %c4_i32_52 = arith.constant 4 : i32
    %c0_i32_53 = arith.constant 0 : i32
    %85 = tpu.memref_slice %arg4[%78, %c0_i32_53] : memref<32x32xf32, #tpu.memory_space<any>> -> memref<1x32xf32, #tpu.memory_space<any>>
    %86 = tpu.memref_squeeze %85 : memref<1x32xf32, #tpu.memory_space<any>> -> memref<32xf32, #tpu.memory_space<any>>
    %c0_i32_54 = arith.constant 0 : i32
    %87 = tpu.memref_slice %arg7[%c4_i32_50, %c0_i32_54] : memref<8x32xf32, #tpu.memory_space<vmem>> -> memref<1x32xf32, #tpu.memory_space<vmem>>
    %88 = tpu.memref_squeeze %87 : memref<1x32xf32, #tpu.memory_space<vmem>> -> memref<32xf32, #tpu.memory_space<vmem>>
    %89 = tpu.memref_slice %arg8[%c1_i32_51, %c4_i32_52] : memref<2x8x!tpu.dma_semaphore, #tpu.memory_space<semaphore_mem>> -> memref<1x1x!tpu.dma_semaphore, #tpu.memory_space<semaphore_mem>>
    %90 = tpu.memref_squeeze %89 : memref<1x1x!tpu.dma_semaphore, #tpu.memory_space<semaphore_mem>> -> memref<!tpu.dma_semaphore, #tpu.memory_space<semaphore_mem>>
    tpu.enqueue_dma source(%86 : memref<32xf32, #tpu.memory_space<any>>) target(%88 : memref<32xf32, #tpu.memory_space<vmem>>) target_semaphore(%90 : memref<!tpu.dma_semaphore, #tpu.memory_space<semaphore_mem>>)
    %c5_i32 = arith.constant 5 : i32
    %91 = arith.addi %0, %c5_i32 : i32
    %92 = arith.index_cast %91 : i32 to index
    %93 = memref.load %arg1[%92] : memref<8xi32, #tpu.memory_space<smem>>
    %c5_i32_55 = arith.constant 5 : i32
    %94 = arith.addi %0, %c5_i32_55 : i32
    %95 = arith.index_cast %94 : i32 to index
    %96 = memref.load %arg2[%95] : memref<8xi32, #tpu.memory_space<smem>>
    %c5_i32_56 = arith.constant 5 : i32
    %c0_i32_57 = arith.constant 0 : i32
    %c5_i32_58 = arith.constant 5 : i32
    %c0_i32_59 = arith.constant 0 : i32
    %97 = tpu.memref_slice %arg4[%93, %c0_i32_59] : memref<32x32xf32, #tpu.memory_space<any>> -> memref<1x32xf32, #tpu.memory_space<any>>
    %98 = tpu.memref_squeeze %97 : memref<1x32xf32, #tpu.memory_space<any>> -> memref<32xf32, #tpu.memory_space<any>>
    %c0_i32_60 = arith.constant 0 : i32
    %99 = tpu.memref_slice %arg6[%c5_i32_56, %c0_i32_60] : memref<8x32xf32, #tpu.memory_space<vmem>> -> memref<1x32xf32, #tpu.memory_space<vmem>>
    %100 = tpu.memref_squeeze %99 : memref<1x32xf32, #tpu.memory_space<vmem>> -> memref<32xf32, #tpu.memory_space<vmem>>
    %101 = tpu.memref_slice %arg8[%c0_i32_57, %c5_i32_58] : memref<2x8x!tpu.dma_semaphore, #tpu.memory_space<semaphore_mem>> -> memref<1x1x!tpu.dma_semaphore, #tpu.memory_space<semaphore_mem>>
    %102 = tpu.memref_squeeze %101 : memref<1x1x!tpu.dma_semaphore, #tpu.memory_space<semaphore_mem>> -> memref<!tpu.dma_semaphore, #tpu.memory_space<semaphore_mem>>
    tpu.enqueue_dma source(%98 : memref<32xf32, #tpu.memory_space<any>>) target(%100 : memref<32xf32, #tpu.memory_space<vmem>>) target_semaphore(%102 : memref<!tpu.dma_semaphore, #tpu.memory_space<semaphore_mem>>)
    %c5_i32_61 = arith.constant 5 : i32
    %c1_i32_62 = arith.constant 1 : i32
    %c5_i32_63 = arith.constant 5 : i32
    %c0_i32_64 = arith.constant 0 : i32
    %103 = tpu.memref_slice %arg4[%96, %c0_i32_64] : memref<32x32xf32, #tpu.memory_space<any>> -> memref<1x32xf32, #tpu.memory_space<any>>
    %104 = tpu.memref_squeeze %103 : memref<1x32xf32, #tpu.memory_space<any>> -> memref<32xf32, #tpu.memory_space<any>>
    %c0_i32_65 = arith.constant 0 : i32
    %105 = tpu.memref_slice %arg7[%c5_i32_61, %c0_i32_65] : memref<8x32xf32, #tpu.memory_space<vmem>> -> memref<1x32xf32, #tpu.memory_space<vmem>>
    %106 = tpu.memref_squeeze %105 : memref<1x32xf32, #tpu.memory_space<vmem>> -> memref<32xf32, #tpu.memory_space<vmem>>
    %107 = tpu.memref_slice %arg8[%c1_i32_62, %c5_i32_63] : memref<2x8x!tpu.dma_semaphore, #tpu.memory_space<semaphore_mem>> -> memref<1x1x!tpu.dma_semaphore, #tpu.memory_space<semaphore_mem>>
    %108 = tpu.memref_squeeze %107 : memref<1x1x!tpu.dma_semaphore, #tpu.memory_space<semaphore_mem>> -> memref<!tpu.dma_semaphore, #tpu.memory_space<semaphore_mem>>
    tpu.enqueue_dma source(%104 : memref<32xf32, #tpu.memory_space<any>>) target(%106 : memref<32xf32, #tpu.memory_space<vmem>>) target_semaphore(%108 : memref<!tpu.dma_semaphore, #tpu.memory_space<semaphore_mem>>)
    %c6_i32 = arith.constant 6 : i32
    %109 = arith.addi %0, %c6_i32 : i32
    %110 = arith.index_cast %109 : i32 to index
    %111 = memref.load %arg1[%110] : memref<8xi32, #tpu.memory_space<smem>>
    %c6_i32_66 = arith.constant 6 : i32
    %112 = arith.addi %0, %c6_i32_66 : i32
    %113 = arith.index_cast %112 : i32 to index
    %114 = memref.load %arg2[%113] : memref<8xi32, #tpu.memory_space<smem>>
    %c6_i32_67 = arith.constant 6 : i32
    %c0_i32_68 = arith.constant 0 : i32
    %c6_i32_69 = arith.constant 6 : i32
    %c0_i32_70 = arith.constant 0 : i32
    %115 = tpu.memref_slice %arg4[%111, %c0_i32_70] : memref<32x32xf32, #tpu.memory_space<any>> -> memref<1x32xf32, #tpu.memory_space<any>>
    %116 = tpu.memref_squeeze %115 : memref<1x32xf32, #tpu.memory_space<any>> -> memref<32xf32, #tpu.memory_space<any>>
    %c0_i32_71 = arith.constant 0 : i32
    %117 = tpu.memref_slice %arg6[%c6_i32_67, %c0_i32_71] : memref<8x32xf32, #tpu.memory_space<vmem>> -> memref<1x32xf32, #tpu.memory_space<vmem>>
    %118 = tpu.memref_squeeze %117 : memref<1x32xf32, #tpu.memory_space<vmem>> -> memref<32xf32, #tpu.memory_space<vmem>>
    %119 = tpu.memref_slice %arg8[%c0_i32_68, %c6_i32_69] : memref<2x8x!tpu.dma_semaphore, #tpu.memory_space<semaphore_mem>> -> memref<1x1x!tpu.dma_semaphore, #tpu.memory_space<semaphore_mem>>
    %120 = tpu.memref_squeeze %119 : memref<1x1x!tpu.dma_semaphore, #tpu.memory_space<semaphore_mem>> -> memref<!tpu.dma_semaphore, #tpu.memory_space<semaphore_mem>>
    tpu.enqueue_dma source(%116 : memref<32xf32, #tpu.memory_space<any>>) target(%118 : memref<32xf32, #tpu.memory_space<vmem>>) target_semaphore(%120 : memref<!tpu.dma_semaphore, #tpu.memory_space<semaphore_mem>>)
    %c6_i32_72 = arith.constant 6 : i32
    %c1_i32_73 = arith.constant 1 : i32
    %c6_i32_74 = arith.constant 6 : i32
    %c0_i32_75 = arith.constant 0 : i32
    %121 = tpu.memref_slice %arg4[%114, %c0_i32_75] : memref<32x32xf32, #tpu.memory_space<any>> -> memref<1x32xf32, #tpu.memory_space<any>>
    %122 = tpu.memref_squeeze %121 : memref<1x32xf32, #tpu.memory_space<any>> -> memref<32xf32, #tpu.memory_space<any>>
    %c0_i32_76 = arith.constant 0 : i32
    %123 = tpu.memref_slice %arg7[%c6_i32_72, %c0_i32_76] : memref<8x32xf32, #tpu.memory_space<vmem>> -> memref<1x32xf32, #tpu.memory_space<vmem>>
    %124 = tpu.memref_squeeze %123 : memref<1x32xf32, #tpu.memory_space<vmem>> -> memref<32xf32, #tpu.memory_space<vmem>>
    %125 = tpu.memref_slice %arg8[%c1_i32_73, %c6_i32_74] : memref<2x8x!tpu.dma_semaphore, #tpu.memory_space<semaphore_mem>> -> memref<1x1x!tpu.dma_semaphore, #tpu.memory_space<semaphore_mem>>
    %126 = tpu.memref_squeeze %125 : memref<1x1x!tpu.dma_semaphore, #tpu.memory_space<semaphore_mem>> -> memref<!tpu.dma_semaphore, #tpu.memory_space<semaphore_mem>>
    tpu.enqueue_dma source(%122 : memref<32xf32, #tpu.memory_space<any>>) target(%124 : memref<32xf32, #tpu.memory_space<vmem>>) target_semaphore(%126 : memref<!tpu.dma_semaphore, #tpu.memory_space<semaphore_mem>>)
    %c7_i32 = arith.constant 7 : i32
    %127 = arith.addi %0, %c7_i32 : i32
    %128 = arith.index_cast %127 : i32 to index
    %129 = memref.load %arg1[%128] : memref<8xi32, #tpu.memory_space<smem>>
    %c7_i32_77 = arith.constant 7 : i32
    %130 = arith.addi %0, %c7_i32_77 : i32
    %131 = arith.index_cast %130 : i32 to index
    %132 = memref.load %arg2[%131] : memref<8xi32, #tpu.memory_space<smem>>
    %c7_i32_78 = arith.constant 7 : i32
    %c0_i32_79 = arith.constant 0 : i32
    %c7_i32_80 = arith.constant 7 : i32
    %c0_i32_81 = arith.constant 0 : i32
    %133 = tpu.memref_slice %arg4[%129, %c0_i32_81] : memref<32x32xf32, #tpu.memory_space<any>> -> memref<1x32xf32, #tpu.memory_space<any>>
    %134 = tpu.memref_squeeze %133 : memref<1x32xf32, #tpu.memory_space<any>> -> memref<32xf32, #tpu.memory_space<any>>
    %c0_i32_82 = arith.constant 0 : i32
    %135 = tpu.memref_slice %arg6[%c7_i32_78, %c0_i32_82] : memref<8x32xf32, #tpu.memory_space<vmem>> -> memref<1x32xf32, #tpu.memory_space<vmem>>
    %136 = tpu.memref_squeeze %135 : memref<1x32xf32, #tpu.memory_space<vmem>> -> memref<32xf32, #tpu.memory_space<vmem>>
    %137 = tpu.memref_slice %arg8[%c0_i32_79, %c7_i32_80] : memref<2x8x!tpu.dma_semaphore, #tpu.memory_space<semaphore_mem>> -> memref<1x1x!tpu.dma_semaphore, #tpu.memory_space<semaphore_mem>>
    %138 = tpu.memref_squeeze %137 : memref<1x1x!tpu.dma_semaphore, #tpu.memory_space<semaphore_mem>> -> memref<!tpu.dma_semaphore, #tpu.memory_space<semaphore_mem>>
    tpu.enqueue_dma source(%134 : memref<32xf32, #tpu.memory_space<any>>) target(%136 : memref<32xf32, #tpu.memory_space<vmem>>) target_semaphore(%138 : memref<!tpu.dma_semaphore, #tpu.memory_space<semaphore_mem>>)
    %c7_i32_83 = arith.constant 7 : i32
    %c1_i32_84 = arith.constant 1 : i32
    %c7_i32_85 = arith.constant 7 : i32
    %c0_i32_86 = arith.constant 0 : i32
    %139 = tpu.memref_slice %arg4[%132, %c0_i32_86] : memref<32x32xf32, #tpu.memory_space<any>> -> memref<1x32xf32, #tpu.memory_space<any>>
    %140 = tpu.memref_squeeze %139 : memref<1x32xf32, #tpu.memory_space<any>> -> memref<32xf32, #tpu.memory_space<any>>
    %c0_i32_87 = arith.constant 0 : i32
    %141 = tpu.memref_slice %arg7[%c7_i32_83, %c0_i32_87] : memref<8x32xf32, #tpu.memory_space<vmem>> -> memref<1x32xf32, #tpu.memory_space<vmem>>
    %142 = tpu.memref_squeeze %141 : memref<1x32xf32, #tpu.memory_space<vmem>> -> memref<32xf32, #tpu.memory_space<vmem>>
    %143 = tpu.memref_slice %arg8[%c1_i32_84, %c7_i32_85] : memref<2x8x!tpu.dma_semaphore, #tpu.memory_space<semaphore_mem>> -> memref<1x1x!tpu.dma_semaphore, #tpu.memory_space<semaphore_mem>>
    %144 = tpu.memref_squeeze %143 : memref<1x1x!tpu.dma_semaphore, #tpu.memory_space<semaphore_mem>> -> memref<!tpu.dma_semaphore, #tpu.memory_space<semaphore_mem>>
    tpu.enqueue_dma source(%140 : memref<32xf32, #tpu.memory_space<any>>) target(%142 : memref<32xf32, #tpu.memory_space<vmem>>) target_semaphore(%144 : memref<!tpu.dma_semaphore, #tpu.memory_space<semaphore_mem>>)
    %c0_i32_88 = arith.constant 0 : i32
    %c0_i32_89 = arith.constant 0 : i32
    %c0_i32_90 = arith.constant 0 : i32
    %c0_i32_91 = arith.constant 0 : i32
    %145 = tpu.memref_slice %arg4[%3, %c0_i32_91] : memref<32x32xf32, #tpu.memory_space<any>> -> memref<1x32xf32, #tpu.memory_space<any>>
    %146 = tpu.memref_squeeze %145 : memref<1x32xf32, #tpu.memory_space<any>> -> memref<32xf32, #tpu.memory_space<any>>
    %c0_i32_92 = arith.constant 0 : i32
    %147 = tpu.memref_slice %arg6[%c0_i32_88, %c0_i32_92] : memref<8x32xf32, #tpu.memory_space<vmem>> -> memref<1x32xf32, #tpu.memory_space<vmem>>
    %148 = tpu.memref_squeeze %147 : memref<1x32xf32, #tpu.memory_space<vmem>> -> memref<32xf32, #tpu.memory_space<vmem>>
    %149 = tpu.memref_slice %arg8[%c0_i32_89, %c0_i32_90] : memref<2x8x!tpu.dma_semaphore, #tpu.memory_space<semaphore_mem>> -> memref<1x1x!tpu.dma_semaphore, #tpu.memory_space<semaphore_mem>>
    %150 = tpu.memref_squeeze %149 : memref<1x1x!tpu.dma_semaphore, #tpu.memory_space<semaphore_mem>> -> memref<!tpu.dma_semaphore, #tpu.memory_space<semaphore_mem>>
    tpu.wait_dma2 semaphore(%150 : memref<!tpu.dma_semaphore, #tpu.memory_space<semaphore_mem>>) src(%146 : memref<32xf32, #tpu.memory_space<any>>) dst(%148 : memref<32xf32, #tpu.memory_space<vmem>>)
    %c0_i32_93 = arith.constant 0 : i32
    %c1_i32_94 = arith.constant 1 : i32
    %c0_i32_95 = arith.constant 0 : i32
    %c0_i32_96 = arith.constant 0 : i32
    %151 = tpu.memref_slice %arg4[%6, %c0_i32_96] : memref<32x32xf32, #tpu.memory_space<any>> -> memref<1x32xf32, #tpu.memory_space<any>>
    %152 = tpu.memref_squeeze %151 : memref<1x32xf32, #tpu.memory_space<any>> -> memref<32xf32, #tpu.memory_space<any>>
    %c0_i32_97 = arith.constant 0 : i32
    %153 = tpu.memref_slice %arg7[%c0_i32_93, %c0_i32_97] : memref<8x32xf32, #tpu.memory_space<vmem>> -> memref<1x32xf32, #tpu.memory_space<vmem>>
    %154 = tpu.memref_squeeze %153 : memref<1x32xf32, #tpu.memory_space<vmem>> -> memref<32xf32, #tpu.memory_space<vmem>>
    %155 = tpu.memref_slice %arg8[%c1_i32_94, %c0_i32_95] : memref<2x8x!tpu.dma_semaphore, #tpu.memory_space<semaphore_mem>> -> memref<1x1x!tpu.dma_semaphore, #tpu.memory_space<semaphore_mem>>
    %156 = tpu.memref_squeeze %155 : memref<1x1x!tpu.dma_semaphore, #tpu.memory_space<semaphore_mem>> -> memref<!tpu.dma_semaphore, #tpu.memory_space<semaphore_mem>>
    tpu.wait_dma2 semaphore(%156 : memref<!tpu.dma_semaphore, #tpu.memory_space<semaphore_mem>>) src(%152 : memref<32xf32, #tpu.memory_space<any>>) dst(%154 : memref<32xf32, #tpu.memory_space<vmem>>)
    %c1_i32_98 = arith.constant 1 : i32
    %c0_i32_99 = arith.constant 0 : i32
    %c1_i32_100 = arith.constant 1 : i32
    %c0_i32_101 = arith.constant 0 : i32
    %157 = tpu.memref_slice %arg4[%21, %c0_i32_101] : memref<32x32xf32, #tpu.memory_space<any>> -> memref<1x32xf32, #tpu.memory_space<any>>
    %158 = tpu.memref_squeeze %157 : memref<1x32xf32, #tpu.memory_space<any>> -> memref<32xf32, #tpu.memory_space<any>>
    %c0_i32_102 = arith.constant 0 : i32
    %159 = tpu.memref_slice %arg6[%c1_i32_98, %c0_i32_102] : memref<8x32xf32, #tpu.memory_space<vmem>> -> memref<1x32xf32, #tpu.memory_space<vmem>>
    %160 = tpu.memref_squeeze %159 : memref<1x32xf32, #tpu.memory_space<vmem>> -> memref<32xf32, #tpu.memory_space<vmem>>
    %161 = tpu.memref_slice %arg8[%c0_i32_99, %c1_i32_100] : memref<2x8x!tpu.dma_semaphore, #tpu.memory_space<semaphore_mem>> -> memref<1x1x!tpu.dma_semaphore, #tpu.memory_space<semaphore_mem>>
    %162 = tpu.memref_squeeze %161 : memref<1x1x!tpu.dma_semaphore, #tpu.memory_space<semaphore_mem>> -> memref<!tpu.dma_semaphore, #tpu.memory_space<semaphore_mem>>
    tpu.wait_dma2 semaphore(%162 : memref<!tpu.dma_semaphore, #tpu.memory_space<semaphore_mem>>) src(%158 : memref<32xf32, #tpu.memory_space<any>>) dst(%160 : memref<32xf32, #tpu.memory_space<vmem>>)
    %c1_i32_103 = arith.constant 1 : i32
    %c1_i32_104 = arith.constant 1 : i32
    %c1_i32_105 = arith.constant 1 : i32
    %c0_i32_106 = arith.constant 0 : i32
    %163 = tpu.memref_slice %arg4[%24, %c0_i32_106] : memref<32x32xf32, #tpu.memory_space<any>> -> memref<1x32xf32, #tpu.memory_space<any>>
    %164 = tpu.memref_squeeze %163 : memref<1x32xf32, #tpu.memory_space<any>> -> memref<32xf32, #tpu.memory_space<any>>
    %c0_i32_107 = arith.constant 0 : i32
    %165 = tpu.memref_slice %arg7[%c1_i32_103, %c0_i32_107] : memref<8x32xf32, #tpu.memory_space<vmem>> -> memref<1x32xf32, #tpu.memory_space<vmem>>
    %166 = tpu.memref_squeeze %165 : memref<1x32xf32, #tpu.memory_space<vmem>> -> memref<32xf32, #tpu.memory_space<vmem>>
    %167 = tpu.memref_slice %arg8[%c1_i32_104, %c1_i32_105] : memref<2x8x!tpu.dma_semaphore, #tpu.memory_space<semaphore_mem>> -> memref<1x1x!tpu.dma_semaphore, #tpu.memory_space<semaphore_mem>>
    %168 = tpu.memref_squeeze %167 : memref<1x1x!tpu.dma_semaphore, #tpu.memory_space<semaphore_mem>> -> memref<!tpu.dma_semaphore, #tpu.memory_space<semaphore_mem>>
    tpu.wait_dma2 semaphore(%168 : memref<!tpu.dma_semaphore, #tpu.memory_space<semaphore_mem>>) src(%164 : memref<32xf32, #tpu.memory_space<any>>) dst(%166 : memref<32xf32, #tpu.memory_space<vmem>>)
    %c2_i32_108 = arith.constant 2 : i32
    %c0_i32_109 = arith.constant 0 : i32
    %c2_i32_110 = arith.constant 2 : i32
    %c0_i32_111 = arith.constant 0 : i32
    %169 = tpu.memref_slice %arg4[%39, %c0_i32_111] : memref<32x32xf32, #tpu.memory_space<any>> -> memref<1x32xf32, #tpu.memory_space<any>>
    %170 = tpu.memref_squeeze %169 : memref<1x32xf32, #tpu.memory_space<any>> -> memref<32xf32, #tpu.memory_space<any>>
    %c0_i32_112 = arith.constant 0 : i32
    %171 = tpu.memref_slice %arg6[%c2_i32_108, %c0_i32_112] : memref<8x32xf32, #tpu.memory_space<vmem>> -> memref<1x32xf32, #tpu.memory_space<vmem>>
    %172 = tpu.memref_squeeze %171 : memref<1x32xf32, #tpu.memory_space<vmem>> -> memref<32xf32, #tpu.memory_space<vmem>>
    %173 = tpu.memref_slice %arg8[%c0_i32_109, %c2_i32_110] : memref<2x8x!tpu.dma_semaphore, #tpu.memory_space<semaphore_mem>> -> memref<1x1x!tpu.dma_semaphore, #tpu.memory_space<semaphore_mem>>
    %174 = tpu.memref_squeeze %173 : memref<1x1x!tpu.dma_semaphore, #tpu.memory_space<semaphore_mem>> -> memref<!tpu.dma_semaphore, #tpu.memory_space<semaphore_mem>>
    tpu.wait_dma2 semaphore(%174 : memref<!tpu.dma_semaphore, #tpu.memory_space<semaphore_mem>>) src(%170 : memref<32xf32, #tpu.memory_space<any>>) dst(%172 : memref<32xf32, #tpu.memory_space<vmem>>)
    %c2_i32_113 = arith.constant 2 : i32
    %c1_i32_114 = arith.constant 1 : i32
    %c2_i32_115 = arith.constant 2 : i32
    %c0_i32_116 = arith.constant 0 : i32
    %175 = tpu.memref_slice %arg4[%42, %c0_i32_116] : memref<32x32xf32, #tpu.memory_space<any>> -> memref<1x32xf32, #tpu.memory_space<any>>
    %176 = tpu.memref_squeeze %175 : memref<1x32xf32, #tpu.memory_space<any>> -> memref<32xf32, #tpu.memory_space<any>>
    %c0_i32_117 = arith.constant 0 : i32
    %177 = tpu.memref_slice %arg7[%c2_i32_113, %c0_i32_117] : memref<8x32xf32, #tpu.memory_space<vmem>> -> memref<1x32xf32, #tpu.memory_space<vmem>>
    %178 = tpu.memref_squeeze %177 : memref<1x32xf32, #tpu.memory_space<vmem>> -> memref<32xf32, #tpu.memory_space<vmem>>
    %179 = tpu.memref_slice %arg8[%c1_i32_114, %c2_i32_115] : memref<2x8x!tpu.dma_semaphore, #tpu.memory_space<semaphore_mem>> -> memref<1x1x!tpu.dma_semaphore, #tpu.memory_space<semaphore_mem>>
    %180 = tpu.memref_squeeze %179 : memref<1x1x!tpu.dma_semaphore, #tpu.memory_space<semaphore_mem>> -> memref<!tpu.dma_semaphore, #tpu.memory_space<semaphore_mem>>
    tpu.wait_dma2 semaphore(%180 : memref<!tpu.dma_semaphore, #tpu.memory_space<semaphore_mem>>) src(%176 : memref<32xf32, #tpu.memory_space<any>>) dst(%178 : memref<32xf32, #tpu.memory_space<vmem>>)
    %c3_i32_118 = arith.constant 3 : i32
    %c0_i32_119 = arith.constant 0 : i32
    %c3_i32_120 = arith.constant 3 : i32
    %c0_i32_121 = arith.constant 0 : i32
    %181 = tpu.memref_slice %arg4[%57, %c0_i32_121] : memref<32x32xf32, #tpu.memory_space<any>> -> memref<1x32xf32, #tpu.memory_space<any>>
    %182 = tpu.memref_squeeze %181 : memref<1x32xf32, #tpu.memory_space<any>> -> memref<32xf32, #tpu.memory_space<any>>
    %c0_i32_122 = arith.constant 0 : i32
    %183 = tpu.memref_slice %arg6[%c3_i32_118, %c0_i32_122] : memref<8x32xf32, #tpu.memory_space<vmem>> -> memref<1x32xf32, #tpu.memory_space<vmem>>
    %184 = tpu.memref_squeeze %183 : memref<1x32xf32, #tpu.memory_space<vmem>> -> memref<32xf32, #tpu.memory_space<vmem>>
    %185 = tpu.memref_slice %arg8[%c0_i32_119, %c3_i32_120] : memref<2x8x!tpu.dma_semaphore, #tpu.memory_space<semaphore_mem>> -> memref<1x1x!tpu.dma_semaphore, #tpu.memory_space<semaphore_mem>>
    %186 = tpu.memref_squeeze %185 : memref<1x1x!tpu.dma_semaphore, #tpu.memory_space<semaphore_mem>> -> memref<!tpu.dma_semaphore, #tpu.memory_space<semaphore_mem>>
    tpu.wait_dma2 semaphore(%186 : memref<!tpu.dma_semaphore, #tpu.memory_space<semaphore_mem>>) src(%182 : memref<32xf32, #tpu.memory_space<any>>) dst(%184 : memref<32xf32, #tpu.memory_space<vmem>>)
    %c3_i32_123 = arith.constant 3 : i32
    %c1_i32_124 = arith.constant 1 : i32
    %c3_i32_125 = arith.constant 3 : i32
    %c0_i32_126 = arith.constant 0 : i32
    %187 = tpu.memref_slice %arg4[%60, %c0_i32_126] : memref<32x32xf32, #tpu.memory_space<any>> -> memref<1x32xf32, #tpu.memory_space<any>>
    %188 = tpu.memref_squeeze %187 : memref<1x32xf32, #tpu.memory_space<any>> -> memref<32xf32, #tpu.memory_space<any>>
    %c0_i32_127 = arith.constant 0 : i32
    %189 = tpu.memref_slice %arg7[%c3_i32_123, %c0_i32_127] : memref<8x32xf32, #tpu.memory_space<vmem>> -> memref<1x32xf32, #tpu.memory_space<vmem>>
    %190 = tpu.memref_squeeze %189 : memref<1x32xf32, #tpu.memory_space<vmem>> -> memref<32xf32, #tpu.memory_space<vmem>>
    %191 = tpu.memref_slice %arg8[%c1_i32_124, %c3_i32_125] : memref<2x8x!tpu.dma_semaphore, #tpu.memory_space<semaphore_mem>> -> memref<1x1x!tpu.dma_semaphore, #tpu.memory_space<semaphore_mem>>
    %192 = tpu.memref_squeeze %191 : memref<1x1x!tpu.dma_semaphore, #tpu.memory_space<semaphore_mem>> -> memref<!tpu.dma_semaphore, #tpu.memory_space<semaphore_mem>>
    tpu.wait_dma2 semaphore(%192 : memref<!tpu.dma_semaphore, #tpu.memory_space<semaphore_mem>>) src(%188 : memref<32xf32, #tpu.memory_space<any>>) dst(%190 : memref<32xf32, #tpu.memory_space<vmem>>)
    %c4_i32_128 = arith.constant 4 : i32
    %c0_i32_129 = arith.constant 0 : i32
    %c4_i32_130 = arith.constant 4 : i32
    %c0_i32_131 = arith.constant 0 : i32
    %193 = tpu.memref_slice %arg4[%75, %c0_i32_131] : memref<32x32xf32, #tpu.memory_space<any>> -> memref<1x32xf32, #tpu.memory_space<any>>
    %194 = tpu.memref_squeeze %193 : memref<1x32xf32, #tpu.memory_space<any>> -> memref<32xf32, #tpu.memory_space<any>>
    %c0_i32_132 = arith.constant 0 : i32
    %195 = tpu.memref_slice %arg6[%c4_i32_128, %c0_i32_132] : memref<8x32xf32, #tpu.memory_space<vmem>> -> memref<1x32xf32, #tpu.memory_space<vmem>>
    %196 = tpu.memref_squeeze %195 : memref<1x32xf32, #tpu.memory_space<vmem>> -> memref<32xf32, #tpu.memory_space<vmem>>
    %197 = tpu.memref_slice %arg8[%c0_i32_129, %c4_i32_130] : memref<2x8x!tpu.dma_semaphore, #tpu.memory_space<semaphore_mem>> -> memref<1x1x!tpu.dma_semaphore, #tpu.memory_space<semaphore_mem>>
    %198 = tpu.memref_squeeze %197 : memref<1x1x!tpu.dma_semaphore, #tpu.memory_space<semaphore_mem>> -> memref<!tpu.dma_semaphore, #tpu.memory_space<semaphore_mem>>
    tpu.wait_dma2 semaphore(%198 : memref<!tpu.dma_semaphore, #tpu.memory_space<semaphore_mem>>) src(%194 : memref<32xf32, #tpu.memory_space<any>>) dst(%196 : memref<32xf32, #tpu.memory_space<vmem>>)
    %c4_i32_133 = arith.constant 4 : i32
    %c1_i32_134 = arith.constant 1 : i32
    %c4_i32_135 = arith.constant 4 : i32
    %c0_i32_136 = arith.constant 0 : i32
    %199 = tpu.memref_slice %arg4[%78, %c0_i32_136] : memref<32x32xf32, #tpu.memory_space<any>> -> memref<1x32xf32, #tpu.memory_space<any>>
    %200 = tpu.memref_squeeze %199 : memref<1x32xf32, #tpu.memory_space<any>> -> memref<32xf32, #tpu.memory_space<any>>
    %c0_i32_137 = arith.constant 0 : i32
    %201 = tpu.memref_slice %arg7[%c4_i32_133, %c0_i32_137] : memref<8x32xf32, #tpu.memory_space<vmem>> -> memref<1x32xf32, #tpu.memory_space<vmem>>
    %202 = tpu.memref_squeeze %201 : memref<1x32xf32, #tpu.memory_space<vmem>> -> memref<32xf32, #tpu.memory_space<vmem>>
    %203 = tpu.memref_slice %arg8[%c1_i32_134, %c4_i32_135] : memref<2x8x!tpu.dma_semaphore, #tpu.memory_space<semaphore_mem>> -> memref<1x1x!tpu.dma_semaphore, #tpu.memory_space<semaphore_mem>>
    %204 = tpu.memref_squeeze %203 : memref<1x1x!tpu.dma_semaphore, #tpu.memory_space<semaphore_mem>> -> memref<!tpu.dma_semaphore, #tpu.memory_space<semaphore_mem>>
    tpu.wait_dma2 semaphore(%204 : memref<!tpu.dma_semaphore, #tpu.memory_space<semaphore_mem>>) src(%200 : memref<32xf32, #tpu.memory_space<any>>) dst(%202 : memref<32xf32, #tpu.memory_space<vmem>>)
    %c5_i32_138 = arith.constant 5 : i32
    %c0_i32_139 = arith.constant 0 : i32
    %c5_i32_140 = arith.constant 5 : i32
    %c0_i32_141 = arith.constant 0 : i32
    %205 = tpu.memref_slice %arg4[%93, %c0_i32_141] : memref<32x32xf32, #tpu.memory_space<any>> -> memref<1x32xf32, #tpu.memory_space<any>>
    %206 = tpu.memref_squeeze %205 : memref<1x32xf32, #tpu.memory_space<any>> -> memref<32xf32, #tpu.memory_space<any>>
    %c0_i32_142 = arith.constant 0 : i32
    %207 = tpu.memref_slice %arg6[%c5_i32_138, %c0_i32_142] : memref<8x32xf32, #tpu.memory_space<vmem>> -> memref<1x32xf32, #tpu.memory_space<vmem>>
    %208 = tpu.memref_squeeze %207 : memref<1x32xf32, #tpu.memory_space<vmem>> -> memref<32xf32, #tpu.memory_space<vmem>>
    %209 = tpu.memref_slice %arg8[%c0_i32_139, %c5_i32_140] : memref<2x8x!tpu.dma_semaphore, #tpu.memory_space<semaphore_mem>> -> memref<1x1x!tpu.dma_semaphore, #tpu.memory_space<semaphore_mem>>
    %210 = tpu.memref_squeeze %209 : memref<1x1x!tpu.dma_semaphore, #tpu.memory_space<semaphore_mem>> -> memref<!tpu.dma_semaphore, #tpu.memory_space<semaphore_mem>>
    tpu.wait_dma2 semaphore(%210 : memref<!tpu.dma_semaphore, #tpu.memory_space<semaphore_mem>>) src(%206 : memref<32xf32, #tpu.memory_space<any>>) dst(%208 : memref<32xf32, #tpu.memory_space<vmem>>)
    %c5_i32_143 = arith.constant 5 : i32
    %c1_i32_144 = arith.constant 1 : i32
    %c5_i32_145 = arith.constant 5 : i32
    %c0_i32_146 = arith.constant 0 : i32
    %211 = tpu.memref_slice %arg4[%96, %c0_i32_146] : memref<32x32xf32, #tpu.memory_space<any>> -> memref<1x32xf32, #tpu.memory_space<any>>
    %212 = tpu.memref_squeeze %211 : memref<1x32xf32, #tpu.memory_space<any>> -> memref<32xf32, #tpu.memory_space<any>>
    %c0_i32_147 = arith.constant 0 : i32
    %213 = tpu.memref_slice %arg7[%c5_i32_143, %c0_i32_147] : memref<8x32xf32, #tpu.memory_space<vmem>> -> memref<1x32xf32, #tpu.memory_space<vmem>>
    %214 = tpu.memref_squeeze %213 : memref<1x32xf32, #tpu.memory_space<vmem>> -> memref<32xf32, #tpu.memory_space<vmem>>
    %215 = tpu.memref_slice %arg8[%c1_i32_144, %c5_i32_145] : memref<2x8x!tpu.dma_semaphore, #tpu.memory_space<semaphore_mem>> -> memref<1x1x!tpu.dma_semaphore, #tpu.memory_space<semaphore_mem>>
    %216 = tpu.memref_squeeze %215 : memref<1x1x!tpu.dma_semaphore, #tpu.memory_space<semaphore_mem>> -> memref<!tpu.dma_semaphore, #tpu.memory_space<semaphore_mem>>
    tpu.wait_dma2 semaphore(%216 : memref<!tpu.dma_semaphore, #tpu.memory_space<semaphore_mem>>) src(%212 : memref<32xf32, #tpu.memory_space<any>>) dst(%214 : memref<32xf32, #tpu.memory_space<vmem>>)
    %c6_i32_148 = arith.constant 6 : i32
    %c0_i32_149 = arith.constant 0 : i32
    %c6_i32_150 = arith.constant 6 : i32
    %c0_i32_151 = arith.constant 0 : i32
    %217 = tpu.memref_slice %arg4[%111, %c0_i32_151] : memref<32x32xf32, #tpu.memory_space<any>> -> memref<1x32xf32, #tpu.memory_space<any>>
    %218 = tpu.memref_squeeze %217 : memref<1x32xf32, #tpu.memory_space<any>> -> memref<32xf32, #tpu.memory_space<any>>
    %c0_i32_152 = arith.constant 0 : i32
    %219 = tpu.memref_slice %arg6[%c6_i32_148, %c0_i32_152] : memref<8x32xf32, #tpu.memory_space<vmem>> -> memref<1x32xf32, #tpu.memory_space<vmem>>
    %220 = tpu.memref_squeeze %219 : memref<1x32xf32, #tpu.memory_space<vmem>> -> memref<32xf32, #tpu.memory_space<vmem>>
    %221 = tpu.memref_slice %arg8[%c0_i32_149, %c6_i32_150] : memref<2x8x!tpu.dma_semaphore, #tpu.memory_space<semaphore_mem>> -> memref<1x1x!tpu.dma_semaphore, #tpu.memory_space<semaphore_mem>>
    %222 = tpu.memref_squeeze %221 : memref<1x1x!tpu.dma_semaphore, #tpu.memory_space<semaphore_mem>> -> memref<!tpu.dma_semaphore, #tpu.memory_space<semaphore_mem>>
    tpu.wait_dma2 semaphore(%222 : memref<!tpu.dma_semaphore, #tpu.memory_space<semaphore_mem>>) src(%218 : memref<32xf32, #tpu.memory_space<any>>) dst(%220 : memref<32xf32, #tpu.memory_space<vmem>>)
    %c6_i32_153 = arith.constant 6 : i32
    %c1_i32_154 = arith.constant 1 : i32
    %c6_i32_155 = arith.constant 6 : i32
    %c0_i32_156 = arith.constant 0 : i32
    %223 = tpu.memref_slice %arg4[%114, %c0_i32_156] : memref<32x32xf32, #tpu.memory_space<any>> -> memref<1x32xf32, #tpu.memory_space<any>>
    %224 = tpu.memref_squeeze %223 : memref<1x32xf32, #tpu.memory_space<any>> -> memref<32xf32, #tpu.memory_space<any>>
    %c0_i32_157 = arith.constant 0 : i32
    %225 = tpu.memref_slice %arg7[%c6_i32_153, %c0_i32_157] : memref<8x32xf32, #tpu.memory_space<vmem>> -> memref<1x32xf32, #tpu.memory_space<vmem>>
    %226 = tpu.memref_squeeze %225 : memref<1x32xf32, #tpu.memory_space<vmem>> -> memref<32xf32, #tpu.memory_space<vmem>>
    %227 = tpu.memref_slice %arg8[%c1_i32_154, %c6_i32_155] : memref<2x8x!tpu.dma_semaphore, #tpu.memory_space<semaphore_mem>> -> memref<1x1x!tpu.dma_semaphore, #tpu.memory_space<semaphore_mem>>
    %228 = tpu.memref_squeeze %227 : memref<1x1x!tpu.dma_semaphore, #tpu.memory_space<semaphore_mem>> -> memref<!tpu.dma_semaphore, #tpu.memory_space<semaphore_mem>>
    tpu.wait_dma2 semaphore(%228 : memref<!tpu.dma_semaphore, #tpu.memory_space<semaphore_mem>>) src(%224 : memref<32xf32, #tpu.memory_space<any>>) dst(%226 : memref<32xf32, #tpu.memory_space<vmem>>)
    %c7_i32_158 = arith.constant 7 : i32
    %c0_i32_159 = arith.constant 0 : i32
    %c7_i32_160 = arith.constant 7 : i32
    %c0_i32_161 = arith.constant 0 : i32
    %229 = tpu.memref_slice %arg4[%129, %c0_i32_161] : memref<32x32xf32, #tpu.memory_space<any>> -> memref<1x32xf32, #tpu.memory_space<any>>
    %230 = tpu.memref_squeeze %229 : memref<1x32xf32, #tpu.memory_space<any>> -> memref<32xf32, #tpu.memory_space<any>>
    %c0_i32_162 = arith.constant 0 : i32
    %231 = tpu.memref_slice %arg6[%c7_i32_158, %c0_i32_162] : memref<8x32xf32, #tpu.memory_space<vmem>> -> memref<1x32xf32, #tpu.memory_space<vmem>>
    %232 = tpu.memref_squeeze %231 : memref<1x32xf32, #tpu.memory_space<vmem>> -> memref<32xf32, #tpu.memory_space<vmem>>
    %233 = tpu.memref_slice %arg8[%c0_i32_159, %c7_i32_160] : memref<2x8x!tpu.dma_semaphore, #tpu.memory_space<semaphore_mem>> -> memref<1x1x!tpu.dma_semaphore, #tpu.memory_space<semaphore_mem>>
    %234 = tpu.memref_squeeze %233 : memref<1x1x!tpu.dma_semaphore, #tpu.memory_space<semaphore_mem>> -> memref<!tpu.dma_semaphore, #tpu.memory_space<semaphore_mem>>
    tpu.wait_dma2 semaphore(%234 : memref<!tpu.dma_semaphore, #tpu.memory_space<semaphore_mem>>) src(%230 : memref<32xf32, #tpu.memory_space<any>>) dst(%232 : memref<32xf32, #tpu.memory_space<vmem>>)
    %c7_i32_163 = arith.constant 7 : i32
    %c1_i32_164 = arith.constant 1 : i32
    %c7_i32_165 = arith.constant 7 : i32
    %c0_i32_166 = arith.constant 0 : i32
    %235 = tpu.memref_slice %arg4[%132, %c0_i32_166] : memref<32x32xf32, #tpu.memory_space<any>> -> memref<1x32xf32, #tpu.memory_space<any>>
    %236 = tpu.memref_squeeze %235 : memref<1x32xf32, #tpu.memory_space<any>> -> memref<32xf32, #tpu.memory_space<any>>
    %c0_i32_167 = arith.constant 0 : i32
    %237 = tpu.memref_slice %arg7[%c7_i32_163, %c0_i32_167] : memref<8x32xf32, #tpu.memory_space<vmem>> -> memref<1x32xf32, #tpu.memory_space<vmem>>
    %238 = tpu.memref_squeeze %237 : memref<1x32xf32, #tpu.memory_space<vmem>> -> memref<32xf32, #tpu.memory_space<vmem>>
    %239 = tpu.memref_slice %arg8[%c1_i32_164, %c7_i32_165] : memref<2x8x!tpu.dma_semaphore, #tpu.memory_space<semaphore_mem>> -> memref<1x1x!tpu.dma_semaphore, #tpu.memory_space<semaphore_mem>>
    %240 = tpu.memref_squeeze %239 : memref<1x1x!tpu.dma_semaphore, #tpu.memory_space<semaphore_mem>> -> memref<!tpu.dma_semaphore, #tpu.memory_space<semaphore_mem>>
    tpu.wait_dma2 semaphore(%240 : memref<!tpu.dma_semaphore, #tpu.memory_space<semaphore_mem>>) src(%236 : memref<32xf32, #tpu.memory_space<any>>) dst(%238 : memref<32xf32, #tpu.memory_space<vmem>>)
    %c0 = arith.constant 0 : index
    %c0_168 = arith.constant 0 : index
    %241 = vector.load %arg6[%c0, %c0_168] : memref<8x32xf32, #tpu.memory_space<vmem>>, vector<8x32xf32>
    %c0_169 = arith.constant 0 : index
    %c0_170 = arith.constant 0 : index
    %242 = vector.load %arg7[%c0_169, %c0_170] : memref<8x32xf32, #tpu.memory_space<vmem>>, vector<8x32xf32>
    %243 = arith.subf %241, %242 : vector<8x32xf32>
    %244 = arith.mulf %243, %243 : vector<8x32xf32>
    %cst = arith.constant 1.000000e+00 : f32
    %245 = vector.broadcast %cst : f32 to vector<1x32xf32>
    %cst_171 = arith.constant dense<0.000000e+00> : vector<1x8xf32>
    %246 = tpu.matmul %245, %244, %cst_171 {dimension_numbers = #tpu.dot_dimension_numbers<[1], [1], [0], [0], [0, 0, 1, 0], [], []>, precision = #tpu.contract_precision<fp32>} : vector<1x32xf32>, vector<8x32xf32>, vector<1x8xf32> -> vector<1x8xf32>
    %c0_172 = arith.constant 0 : index
    %247 = memref.load %arg3[%c0_172] : memref<1xf32, #tpu.memory_space<smem>>
    %248 = math.sqrt %246 : vector<1x8xf32>
    %249 = vector.broadcast %247 : f32 to vector<1x8xf32>
    %250 = arith.subf %249, %248 : vector<1x8xf32>
    %c0_173 = arith.constant 0 : index
    %c0_174 = arith.constant 0 : index
    %251 = vector.load %arg5[%c0_173, %c0_174] : memref<1x8xf32, #tpu.memory_space<vmem>>, vector<1x8xf32>
    tpu.vector_store %arg5[%c0_173, %c0_174], %250 {strides = array<i32>} : memref<1x8xf32, #tpu.memory_space<vmem>>, vector<1x8xf32>,
    return
  }
  func.func @transform_0(%arg0: i32) -> i32 {
    %c0_i32 = arith.constant 0 : i32
    %c0_i32_0 = arith.constant 0 : i32
    return %c0_i32 : i32
  }
  func.func @transform_1(%arg0: i32) -> i32 {
    %c0_i32 = arith.constant 0 : i32
    %c0_i32_0 = arith.constant 0 : i32
    return %c0_i32 : i32
  }
  func.func @transform_2(%arg0: i32) -> i32 {
    %c0_i32 = arith.constant 0 : i32
    %c0_i32_0 = arith.constant 0 : i32
    return %c0_i32 : i32
  }
  func.func @transform_4(%arg0: i32) -> (i32, i32) {
    %c0_i32 = arith.constant 0 : i32
    %c0_i32_0 = arith.constant 0 : i32
    return %c0_i32, %arg0 : i32, i32
  }
}

</mosaic_0001>

<bundles_post_ra>
// kernel: embedding_model_forward.1
= control target key start
LH: loop header
LB: loop body
LE: loop exit
PB: predicated region body
PF: predicated region fallthrough
CT: control target
= control target key end

     0   :  { %10 = vsyncpa [#allocation8], 0  ;;  %s1430_s0 = inlined_call_operand.vmem [shape: s32[8], index: 0, kind: input, shape index: {}]   ;;  %s1431_s1 = inlined_call_operand.vmem [shape: s32[8], index: 1, kind: input, shape index: {}]   ;;  %s1432_s2 = inlined_call_operand.<no memory space> [shape: f32[1], index: 2, kind: input, shape index: {}]   ;;  %s1433_s3 = inlined_call_operand.hbm [shape: f32[32,32], index: 3, kind: input, shape index: {}]   ;;  %s1434_s4 = inlined_call_operand.hbm [shape: f32[1,8], index: 4, kind: output, shape index: {}]  }
   0x1   :  { %11 = vsyncpa [#allocation10], 0 }
   0x2   :  { %12 = vsyncpa [#allocation7], 0  ;;  %s18_s17 = sshll.u32 %s1430_s0, 4  ;;  %s27_s20 = sshll.u32 %s1431_s1, 4  ;;  %s19_s17 = int_to_ptr.vmem [resolvable:$true] %s18_s17  ;;  %s28_s20 = int_to_ptr.vmem [resolvable:$true] %s27_s20 }
   0x3   :  { %s1196_s21 = smov [#allocation6]   ;;  %s1197_s22 = smov [#allocation9]  }
   0x4   :  { %21 = dma.vmem_to_smem %s19_s17, 16, %s1196_s21, [#allocation8]  }
   0x5   :  { %30 = dma.vmem_to_smem %s28_s20, 16, %s1197_s22, [#allocation10]  }
   0x6   :  { %1158 = dma.done.wait [#allocation8], 16  }
   0x7   :  { %1159 = vsyncadd [#allocation8], 4294967280 }
   0x8   :  { %1160 = dma.done.wait [#allocation10], 16  }
   0x9   :  { %1161 = vsyncadd [#allocation10], 4294967280 }
   0xa   :  { %41 = sfence }
   0xb   :  { %s43_s23 = sld [smem:[#allocation6]]  ;;  %s1198_s24 = smov [#allocation2]  }
   0xc   :  { %s55_s25 = sshll.u32 %s1198_s24, 4  ;;  %s44_s26 = sld [smem:[#allocation9]]  ;;  %s56_s25 = int_to_ptr.vmem [resolvable:$true] %s55_s25 }
   0xd   :  { %s1199_s0 = smov [#allocation3]   ;;  %s1250_s1 = sld [smem:[#allocation6 + $0x1]] }
   0xe   :  { %s1248_s27 = sshll.u32 %s1199_s0, 4  ;;  %s1200_s28 = smov [#allocation2 + $0x1]   ;;  %s71_s27 = int_to_ptr.vmem [resolvable:$true] %s1248_s27 }
   0xf   :  { %s1253_s29 = sshll.u32 %s1200_s28, 4  ;;  %s1255_s30 = sld [smem:[#allocation9 + $0x1]]  ;;  %s90_s29 = int_to_ptr.vmem [resolvable:$true] %s1253_s29 }
  0x10   :  { %s1267_s17 = scalar_lea.hbm %s1433_s3, 32 }
  0x11   :  { %s45_s7 = scalar_lea.hbm %s1433_s3, %s43_s23 }
  0x12   :  { %s53_s8 = sshll.u32 %s45_s7, 4  ;;  %s59_s11 = scalar_lea.hbm %s1433_s3, %s44_s26  ;;  %s54_s8 = int_to_ptr.hbm [resolvable:$true] %s53_s8 }
  0x13   :  { %s68_s12 = sshll.u32 %s59_s11, 4  ;;  %s750_s13 = sshra.s32 %s54_s8, 4  ;;  %s751_s13 = int_to_ptr.hbm [resolvable:$true] %s750_s13  ;;  %s69_s12 = int_to_ptr.hbm [resolvable:$true] %s68_s12 }
  0x14   :  { %s752_s14 = scalar_lea.hbm %s751_s13, 1  ;;  %p755_p1 = scmp.lt.s32.totalorder %s751_s13, %s1433_s3 }
  0x15   :  { %p753_p0 = scmp.ne.s32.totalorder %s751_s13, %s752_s14  ;;  %p756_p2 = scmp.lt.s32.totalorder %s1267_s17, %s752_s14 }
  0x17   :  { %p757_p3 = por %p756_p2, %p755_p1 }
  0x19   :  { %p758_p4 = pnand %p757_p3, %p753_p0 }
  0x1b   :  { %761 = shalt.err (!%p758_p4)  }
  0x1c   :  { %58 = dma.hbm_to_vmem [thread:$0]  %s54_s8, 16, %s56_s25, [#allocation4] }
  0x1d   :  { %s77_s22 = scalar_lea.hbm %s1433_s3, %s1250_s1  ;;  %s774_s23 = sshra.s32 %s69_s12, 4  ;;  %s775_s23 = int_to_ptr.hbm [resolvable:$true] %s774_s23 }
  0x1e   :  { %s776_s24 = scalar_lea.hbm %s775_s23, 1  ;;  %p779_p6 = scmp.lt.s32.totalorder %s775_s23, %s1433_s3 }
  0x1f   :  { %p777_p5 = scmp.ne.s32.totalorder %s775_s23, %s776_s24  ;;  %p780_p7 = scmp.lt.s32.totalorder %s1267_s17, %s776_s24 }
  0x21   :  { %p781_p8 = por %p780_p7, %p779_p6 }
  0x23   :  { %p782_p9 = pnand %p781_p8, %p777_p5 }
  0x25   :  { %785 = shalt.err (!%p782_p9)  }
  0x26   :  { %73 = dma.hbm_to_vmem [thread:$0]  %s69_s12, 16, %s71_s27, [#allocation4 + $0x8] }
  0x27   :  { %s87_s25 = sshll.u32 %s77_s22, 4  ;;  %s93_s5 = scalar_lea.hbm %s1433_s3, %s1255_s30  ;;  %s88_s25 = int_to_ptr.hbm [resolvable:$true] %s87_s25 }
  0x28   :  { %s103_s6 = sshll.u32 %s93_s5, 4  ;;  %s798_s7 = sshra.s32 %s88_s25, 4  ;;  %s799_s7 = int_to_ptr.hbm [resolvable:$true] %s798_s7  ;;  %s104_s6 = int_to_ptr.hbm [resolvable:$true] %s103_s6 }
  0x29   :  { %s800_s8 = scalar_lea.hbm %s799_s7, 1  ;;  %p803_p11 = scmp.lt.s32.totalorder %s799_s7, %s1433_s3 }
  0x2a   :  { %p801_p10 = scmp.ne.s32.totalorder %s799_s7, %s800_s8  ;;  %p804_p12 = scmp.lt.s32.totalorder %s1267_s17, %s800_s8 }
  0x2c   :  { %p805_p13 = por %p804_p12, %p803_p11 }
  0x2e   :  { %p806_p0 = pnand %p805_p13, %p801_p10 }
  0x30   :  { %809 = shalt.err (!%p806_p0)  }
  0x31   :  { %92 = dma.hbm_to_vmem [thread:$0]  %s88_s25, 16, %s90_s29, [#allocation4 + $0x1] }
  0x32   :  { %s1201_s27 = smov [#allocation3 + $0x1]   ;;  %s672_s11 = sld [smem:[#allocation6 + $0x2]] }
  0x33   :  { %s105_s30 = sshll.u32 %s1201_s27, 4  ;;  %s822_s12 = sshra.s32 %s104_s6, 4  ;;  %s106_s30 = int_to_ptr.vmem [resolvable:$true] %s105_s30  ;;  %s823_s12 = int_to_ptr.hbm [resolvable:$true] %s822_s12 }
  0x34   :  { %s824_s13 = scalar_lea.hbm %s823_s12, 1  ;;  %p827_p2 = scmp.lt.s32.totalorder %s823_s12, %s1433_s3 }
  0x35   :  { %p825_p1 = scmp.ne.s32.totalorder %s823_s12, %s824_s13  ;;  %p828_p3 = scmp.lt.s32.totalorder %s1267_s17, %s824_s13 }
  0x37   :  { %p829_p4 = por %p828_p3, %p827_p2 }
  0x39   :  { %p830_p5 = pnand %p829_p4, %p825_p1 }
  0x3b   :  { %833 = shalt.err (!%p830_p5)  }
  0x3c   :  { %108 = dma.hbm_to_vmem [thread:$0]  %s104_s6, 16, %s106_s30, [#allocation4 + $0x9] }
  0x3d   :  { %s1202_s16 = smov [#allocation2 + $0x2]   ;;  %s673_s18 = sld [smem:[#allocation9 + $0x2]] }
  0x3e   :  { %s124_s29 = sshll.u32 %s1202_s16, 4  ;;  %s1203_s19 = smov [#allocation3 + $0x2]   ;;  %s125_s29 = int_to_ptr.vmem [resolvable:$true] %s124_s29 }
  0x3f   :  { %s1297_s20 = sshll.u32 %s1203_s19, 4  ;;  %s674_s21 = sld [smem:[#allocation6 + $0x3]]  ;;  %s141_s20 = int_to_ptr.vmem [resolvable:$true] %s1297_s20 }
  0x40   :  { %s112_s24 = scalar_lea.hbm %s1433_s3, %s672_s11  ;;  %s1204_s0 = smov [#allocation2 + $0x3]  }
  0x41   :  { %s122_s26 = sshll.u32 %s112_s24, 4  ;;  %s1303_s25 = sshll.u32 %s1204_s0, 4  ;;  %s123_s26 = int_to_ptr.hbm [resolvable:$true] %s122_s26  ;;  %s160_s25 = int_to_ptr.vmem [resolvable:$true] %s1303_s25 }
  0x42   :  { %s846_s28 = sshra.s32 %s123_s26, 4  ;;  %s847_s28 = int_to_ptr.hbm [resolvable:$true] %s846_s28 }
  0x43   :  { %s848_s1 = scalar_lea.hbm %s847_s28, 1  ;;  %p851_p7 = scmp.lt.s32.totalorder %s847_s28, %s1433_s3 }
  0x44   :  { %p849_p6 = scmp.ne.s32.totalorder %s847_s28, %s848_s1  ;;  %p852_p8 = scmp.lt.s32.totalorder %s1267_s17, %s848_s1 }
  0x46   :  { %p853_p9 = por %p852_p8, %p851_p7 }
  0x48   :  { %p854_p10 = pnand %p853_p9, %p849_p6 }
  0x4a   :  { %857 = shalt.err (!%p854_p10)  }
  0x4b   :  { %127 = dma.hbm_to_vmem [thread:$0]  %s123_s26, 16, %s125_s29, [#allocation4 + $0x2] }
  0x4c   :  { %s128_s9 = scalar_lea.hbm %s1433_s3, %s673_s18  ;;  %s147_s11 = scalar_lea.hbm %s1433_s3, %s674_s21 }
  0x4d   :  { %s138_s10 = sshll.u32 %s128_s9, 4  ;;  %s157_s12 = sshll.u32 %s147_s11, 4  ;;  %s139_s10 = int_to_ptr.hbm [resolvable:$true] %s138_s10  ;;  %s158_s12 = int_to_ptr.hbm [resolvable:$true] %s157_s12 }
  0x4e   :  { %s870_s13 = sshra.s32 %s139_s10, 4  ;;  %s871_s13 = int_to_ptr.hbm [resolvable:$true] %s870_s13 }
  0x4f   :  { %s872_s14 = scalar_lea.hbm %s871_s13, 1  ;;  %p875_p12 = scmp.lt.s32.totalorder %s871_s13, %s1433_s3 }
  0x50   :  { %p873_p11 = scmp.ne.s32.totalorder %s871_s13, %s872_s14  ;;  %p876_p13 = scmp.lt.s32.totalorder %s1267_s17, %s872_s14 }
  0x52   :  { %p877_p0 = por %p876_p13, %p875_p12 }
  0x54   :  { %p878_p1 = pnand %p877_p0, %p873_p11 }
  0x56   :  { %881 = shalt.err (!%p878_p1)  }
  0x57   :  { %143 = dma.hbm_to_vmem [thread:$0]  %s139_s10, 16, %s141_s20, [#allocation4 + $0xa] }
  0x58   :  { %s675_s29 = sld [smem:[#allocation9 + $0x3]]  ;;  %s894_s18 = sshra.s32 %s158_s12, 4  ;;  %s895_s18 = int_to_ptr.hbm [resolvable:$true] %s894_s18 }
  0x59   :  { %s896_s19 = scalar_lea.hbm %s895_s18, 1  ;;  %p899_p3 = scmp.lt.s32.totalorder %s895_s18, %s1433_s3 }
  0x5a   :  { %p897_p2 = scmp.ne.s32.totalorder %s895_s18, %s896_s19  ;;  %p900_p4 = scmp.lt.s32.totalorder %s1267_s17, %s896_s19 }
  0x5c   :  { %p901_p5 = por %p900_p4, %p899_p3 }
  0x5e   :  { %p902_p6 = pnand %p901_p5, %p897_p2 }
  0x60   :  { %905 = shalt.err (!%p902_p6)  }
  0x61   :  { %162 = dma.hbm_to_vmem [thread:$0]  %s158_s12, 16, %s160_s25, [#allocation4 + $0x3] }
  0x62   :  { %s676_s23 = sld [smem:[#allocation6 + $0x4]]  ;;  %s1205_s24 = smov [#allocation3 + $0x3]  }
  0x63   :  { %s175_s26 = sshll.u32 %s1205_s24, 4  ;;  %s1206_s20 = smov [#allocation2 + $0x4]   ;;  %s176_s26 = int_to_ptr.vmem [resolvable:$true] %s175_s26 }
  0x64   :  { %s1326_s0 = sshll.u32 %s1206_s20, 4  ;;  %s1329_s28 = sld [smem:[#allocation9 + $0x4]]  ;;  %s195_s0 = int_to_ptr.vmem [resolvable:$true] %s1326_s0 }
  0x65   :  { %s163_s6 = scalar_lea.hbm %s1433_s3, %s675_s29  ;;  %s1207_s8 = smov [#allocation3 + $0x4]  }
  0x66   :  { %s173_s7 = sshll.u32 %s163_s6, 4  ;;  %s1334_s9 = sshll.u32 %s1207_s8, 4  ;;  %s174_s7 = int_to_ptr.hbm [resolvable:$true] %s173_s7  ;;  %s211_s9 = int_to_ptr.vmem [resolvable:$true] %s1334_s9 }
  0x67   :  { %s918_s30 = sshra.s32 %s174_s7, 4  ;;  %s919_s30 = int_to_ptr.hbm [resolvable:$true] %s918_s30 }
  0x68   :  { %s182_s27 = scalar_lea.hbm %s1433_s3, %s676_s23  ;;  %s920_s11 = scalar_lea.hbm %s919_s30, 1 }
  0x69   :  { %p921_p7 = scmp.ne.s32.totalorder %s919_s30, %s920_s11  ;;  %p923_p8 = scmp.lt.s32.totalorder %s919_s30, %s1433_s3 }
  0x6a   :  { %p924_p9 = scmp.lt.s32.totalorder %s1267_s17, %s920_s11 }
  0x6c   :  { %p925_p10 = por %p924_p9, %p923_p8 }
  0x6e   :  { %p926_p11 = pnand %p925_p10, %p921_p7 }
  0x70   :  { %929 = shalt.err (!%p926_p11)  }
  0x71   :  { %178 = dma.hbm_to_vmem [thread:$0]  %s174_s7, 16, %s176_s26, [#allocation4 + $0xb] }
  0x72   :  { %s192_s14 = sshll.u32 %s182_s27, 4  ;;  %s198_s29 = scalar_lea.hbm %s1433_s3, %s1329_s28  ;;  %s193_s14 = int_to_ptr.hbm [resolvable:$true] %s192_s14 }
  0x73   :  { %s942_s18 = sshra.s32 %s193_s14, 4  ;;  %s943_s18 = int_to_ptr.hbm [resolvable:$true] %s942_s18 }
  0x74   :  { %s944_s19 = scalar_lea.hbm %s943_s18, 1  ;;  %p947_p13 = scmp.lt.s32.totalorder %s943_s18, %s1433_s3 }
  0x75   :  { %p945_p12 = scmp.ne.s32.totalorder %s943_s18, %s944_s19  ;;  %p948_p0 = scmp.lt.s32.totalorder %s1267_s17, %s944_s19 }
  0x77   :  { %p949_p1 = por %p948_p0, %p947_p13 }
  0x79   :  { %p950_p2 = pnand %p949_p1, %p945_p12 }
  0x7b   :  { %953 = shalt.err (!%p950_p2)  }
  0x7c   :  { %197 = dma.hbm_to_vmem [thread:$0]  %s193_s14, 16, %s195_s0, [#allocation4 + $0x4] }
  0x7d   :  { %s208_s23 = sshll.u32 %s198_s29, 4  ;;  %s678_s24 = sld [smem:[#allocation6 + $0x5]]  ;;  %s209_s23 = int_to_ptr.hbm [resolvable:$true] %s208_s23 }
  0x7e   :  { %s966_s26 = sshra.s32 %s209_s23, 4  ;;  %s967_s26 = int_to_ptr.hbm [resolvable:$true] %s966_s26 }
  0x7f   :  { %s968_s20 = scalar_lea.hbm %s967_s26, 1  ;;  %p971_p4 = scmp.lt.s32.totalorder %s967_s26, %s1433_s3 }
  0x80   :  { %p969_p3 = scmp.ne.s32.totalorder %s967_s26, %s968_s20  ;;  %p972_p5 = scmp.lt.s32.totalorder %s1267_s17, %s968_s20 }
  0x82   :  { %p973_p6 = por %p972_p5, %p971_p4 }
  0x84   :  { %p974_p7 = pnand %p973_p6, %p969_p3 }
  0x86   :  { %977 = shalt.err (!%p974_p7)  }
  0x87   :  { %213 = dma.hbm_to_vmem [thread:$0]  %s209_s23, 16, %s211_s9, [#allocation4 + $0xc] }
  0x88   :  { %s1208_s5 = smov [#allocation2 + $0x5]   ;;  %s679_s7 = sld [smem:[#allocation9 + $0x5]] }
  0x89   :  { %s229_s6 = sshll.u32 %s1208_s5, 4  ;;  %s1209_s0 = smov [#allocation3 + $0x5]   ;;  %s230_s6 = int_to_ptr.vmem [resolvable:$true] %s229_s6 }
  0x8a   :  { %s1358_s8 = sshll.u32 %s1209_s0, 4  ;;  %s680_s25 = sld [smem:[#allocation6 + $0x6]]  ;;  %s246_s8 = int_to_ptr.vmem [resolvable:$true] %s1358_s8 }
  0x8b   :  { %s217_s30 = scalar_lea.hbm %s1433_s3, %s678_s24  ;;  %s1210_s12 = smov [#allocation2 + $0x6]  }
  0x8c   :  { %s227_s11 = sshll.u32 %s217_s30, 4  ;;  %s1364_s13 = sshll.u32 %s1210_s12, 4  ;;  %s228_s11 = int_to_ptr.hbm [resolvable:$true] %s227_s11  ;;  %s265_s13 = int_to_ptr.vmem [resolvable:$true] %s1364_s13 }
  0x8d   :  { %s990_s9 = sshra.s32 %s228_s11, 4  ;;  %s991_s9 = int_to_ptr.hbm [resolvable:$true] %s990_s9 }
  0x8e   :  { %s992_s14 = scalar_lea.hbm %s991_s9, 1  ;;  %p995_p9 = scmp.lt.s32.totalorder %s991_s9, %s1433_s3 }
  0x8f   :  { %p993_p8 = scmp.ne.s32.totalorder %s991_s9, %s992_s14  ;;  %p996_p10 = scmp.lt.s32.totalorder %s1267_s17, %s992_s14 }
  0x91   :  { %p997_p11 = por %p996_p10, %p995_p9 }
  0x93   :  { %p998_p12 = pnand %p997_p11, %p993_p8 }
  0x95   :  { %1001 = shalt.err (!%p998_p12)  }
  0x96   :  { %232 = dma.hbm_to_vmem [thread:$0]  %s228_s11, 16, %s230_s6, [#allocation4 + $0x5] }
  0x97   :  { %s233_s19 = scalar_lea.hbm %s1433_s3, %s679_s7  ;;  %s252_s24 = scalar_lea.hbm %s1433_s3, %s680_s25 }
  0x98   :  { %s243_s21 = sshll.u32 %s233_s19, 4  ;;  %s262_s26 = sshll.u32 %s252_s24, 4  ;;  %s244_s21 = int_to_ptr.hbm [resolvable:$true] %s243_s21  ;;  %s263_s26 = int_to_ptr.hbm [resolvable:$true] %s262_s26 }
  0x99   :  { %s1014_s20 = sshra.s32 %s244_s21, 4  ;;  %s1015_s20 = int_to_ptr.hbm [resolvable:$true] %s1014_s20 }
  0x9a   :  { %s1016_s28 = scalar_lea.hbm %s1015_s20, 1  ;;  %p1019_p0 = scmp.lt.s32.totalorder %s1015_s20, %s1433_s3 }
  0x9b   :  { %p1017_p13 = scmp.ne.s32.totalorder %s1015_s20, %s1016_s28  ;;  %p1020_p1 = scmp.lt.s32.totalorder %s1267_s17, %s1016_s28 }
  0x9d   :  { %p1021_p2 = por %p1020_p1, %p1019_p0 }
  0x9f   :  { %p1022_p3 = pnand %p1021_p2, %p1017_p13 }
  0xa1   :  { %1025 = shalt.err (!%p1022_p3)  }
  0xa2   :  { %248 = dma.hbm_to_vmem [thread:$0]  %s244_s21, 16, %s246_s8, [#allocation4 + $0xd] }
  0xa3   :  { %s681_s6 = sld [smem:[#allocation9 + $0x6]]  ;;  %s1038_s7 = sshra.s32 %s263_s26, 4  ;;  %s1039_s7 = int_to_ptr.hbm [resolvable:$true] %s1038_s7 }
  0xa4   :  { %s1040_s0 = scalar_lea.hbm %s1039_s7, 1  ;;  %p1043_p5 = scmp.lt.s32.totalorder %s1039_s7, %s1433_s3 }
  0xa5   :  { %p1041_p4 = scmp.ne.s32.totalorder %s1039_s7, %s1040_s0  ;;  %p1044_p6 = scmp.lt.s32.totalorder %s1267_s17, %s1040_s0 }
  0xa7   :  { %p1045_p7 = por %p1044_p6, %p1043_p5 }
  0xa9   :  { %p1046_p8 = pnand %p1045_p7, %p1041_p4 }
  0xab   :  { %1049 = shalt.err (!%p1046_p8)  }
  0xac   :  { %267 = dma.hbm_to_vmem [thread:$0]  %s263_s26, 16, %s265_s13, [#allocation4 + $0x6] }
  0xad   :  { %s682_s27 = sld [smem:[#allocation6 + $0x7]]  ;;  %s1211_s30 = smov [#allocation3 + $0x6]  }
  0xae   :  { %s280_s11 = sshll.u32 %s1211_s30, 4  ;;  %s1212_s8 = smov [#allocation2 + $0x7]   ;;  %s281_s11 = int_to_ptr.vmem [resolvable:$true] %s280_s11 }
  0xaf   :  { %s1387_s12 = sshll.u32 %s1212_s8, 4  ;;  %s1390_s9 = sld [smem:[#allocation9 + $0x7]]  ;;  %s300_s12 = int_to_ptr.vmem [resolvable:$true] %s1387_s12 }
  0xb0   :  { %s268_s16 = scalar_lea.hbm %s1433_s3, %s681_s6  ;;  %s1213_s18 = smov [#allocation3 + $0x7]  }
  0xb1   :  { %s278_s29 = sshll.u32 %s268_s16, 4  ;;  %s1395_s19 = sshll.u32 %s1213_s18, 4  ;;  %s279_s29 = int_to_ptr.hbm [resolvable:$true] %s278_s29  ;;  %s316_s19 = int_to_ptr.vmem [resolvable:$true] %s1395_s19 }
  0xb2   :  { %s1062_s23 = sshra.s32 %s279_s29, 4  ;;  %s1063_s23 = int_to_ptr.hbm [resolvable:$true] %s1062_s23 }
  0xb3   :  { %s287_s22 = scalar_lea.hbm %s1433_s3, %s682_s27  ;;  %s1064_s24 = scalar_lea.hbm %s1063_s23, 1 }
  0xb4   :  { %p1065_p9 = scmp.ne.s32.totalorder %s1063_s23, %s1064_s24  ;;  %p1067_p10 = scmp.lt.s32.totalorder %s1063_s23, %s1433_s3 }
  0xb5   :  { %p1068_p11 = scmp.lt.s32.totalorder %s1267_s17, %s1064_s24 }
  0xb7   :  { %p1069_p12 = por %p1068_p11, %p1067_p10 }
  0xb9   :  { %p1070_p13 = pnand %p1069_p12, %p1065_p9 }
  0xbb   :  { %1073 = shalt.err (!%p1070_p13)  }
  0xbc   :  { %283 = dma.hbm_to_vmem [thread:$0]  %s279_s29, 16, %s281_s11, [#allocation4 + $0xe] }
  0xbd   :  { %s297_s28 = sshll.u32 %s287_s22, 4  ;;  %s303_s6 = scalar_lea.hbm %s1433_s3, %s1390_s9  ;;  %s298_s28 = int_to_ptr.hbm [resolvable:$true] %s297_s28 }
  0xbe   :  { %s1086_s7 = sshra.s32 %s298_s28, 4  ;;  %s1087_s7 = int_to_ptr.hbm [resolvable:$true] %s1086_s7 }
  0xbf   :  { %s1088_s0 = scalar_lea.hbm %s1087_s7, 1  ;;  %p1091_p1 = scmp.lt.s32.totalorder %s1087_s7, %s1433_s3 }
  0xc0   :  { %p1089_p0 = scmp.ne.s32.totalorder %s1087_s7, %s1088_s0  ;;  %p1092_p2 = scmp.lt.s32.totalorder %s1267_s17, %s1088_s0 }
  0xc2   :  { %p1093_p3 = por %p1092_p2, %p1091_p1 }
  0xc4   :  { %p1094_p4 = pnand %p1093_p3, %p1089_p0 }
  0xc6   :  { %1097 = shalt.err (!%p1094_p4)  }
  0xc7   :  { %302 = dma.hbm_to_vmem [thread:$0]  %s298_s28, 16, %s300_s12, [#allocation4 + $0x7] }
  0xc8   :  { %s313_s27 = sshll.u32 %s303_s6, 4  ;;  %s314_s27 = int_to_ptr.hbm [resolvable:$true] %s313_s27 }
  0xc9   :  { %s1110_s30 = sshra.s32 %s314_s27, 4  ;;  %s1111_s30 = int_to_ptr.hbm [resolvable:$true] %s1110_s30 }
  0xca   :  { %s1112_s11 = scalar_lea.hbm %s1111_s30, 1  ;;  %p1115_p6 = scmp.lt.s32.totalorder %s1111_s30, %s1433_s3 }
  0xcb   :  { %p1113_p5 = scmp.ne.s32.totalorder %s1111_s30, %s1112_s11  ;;  %p1116_p7 = scmp.lt.s32.totalorder %s1267_s17, %s1112_s11 }
  0xcd   :  { %p1117_p8 = por %p1116_p7, %p1115_p6 }
  0xcf   :  { %p1118_p9 = pnand %p1117_p8, %p1113_p5 }
  0xd1   :  { %1121 = shalt.err (!%p1118_p9)  }
  0xd2   :  { %318 = dma.hbm_to_vmem [thread:$0]  %s314_s27, 16, %s316_s19, [#allocation4 + $0xf] }
  0xd3   :  { %1162 = dma.done.wait [#allocation4], 16 }
  0xd4   :  { %1163 = vsyncadd [#allocation4], 4294967280 }
  0xd5   :  { %1164 = dma.done.wait [#allocation4 + $0x8], 16 }
  0xd6   :  { %1165 = vsyncadd [#allocation4 + $0x8], 4294967280 }
  0xd7   :  { %1166 = dma.done.wait [#allocation4 + $0x1], 16 }
  0xd8   :  { %1167 = vsyncadd [#allocation4 + $0x1], 4294967280 }
  0xd9   :  { %1168 = dma.done.wait [#allocation4 + $0x9], 16 }
  0xda   :  { %1169 = vsyncadd [#allocation4 + $0x9], 4294967280 }
  0xdb   :  { %1170 = dma.done.wait [#allocation4 + $0x2], 16 }
  0xdc   :  { %1171 = vsyncadd [#allocation4 + $0x2], 4294967280 }
  0xdd   :  { %1172 = dma.done.wait [#allocation4 + $0xa], 16 }
  0xde   :  { %1173 = vsyncadd [#allocation4 + $0xa], 4294967280 }
  0xdf   :  { %1174 = dma.done.wait [#allocation4 + $0x3], 16 }
  0xe0   :  { %1175 = vsyncadd [#allocation4 + $0x3], 4294967280 }
  0xe1   :  { %1176 = dma.done.wait [#allocation4 + $0xb], 16 }
  0xe2   :  { %1177 = vsyncadd [#allocation4 + $0xb], 4294967280 }
  0xe3   :  { %1178 = dma.done.wait [#allocation4 + $0x4], 16 }
  0xe4   :  { %1179 = vsyncadd [#allocation4 + $0x4], 4294967280 }
  0xe5   :  { %1180 = dma.done.wait [#allocation4 + $0xc], 16 }
  0xe6   :  { %1181 = vsyncadd [#allocation4 + $0xc], 4294967280 }
  0xe7   :  { %1182 = dma.done.wait [#allocation4 + $0x5], 16 }
  0xe8   :  { %1183 = vsyncadd [#allocation4 + $0x5], 4294967280 }
  0xe9   :  { %1184 = dma.done.wait [#allocation4 + $0xd], 16 }
  0xea   :  { %1185 = vsyncadd [#allocation4 + $0xd], 4294967280 }
  0xeb   :  { %1186 = dma.done.wait [#allocation4 + $0x6], 16 }
  0xec   :  { %1187 = vsyncadd [#allocation4 + $0x6], 4294967280 }
  0xed   :  { %1188 = dma.done.wait [#allocation4 + $0xe], 16 }
  0xee   :  { %1189 = vsyncadd [#allocation4 + $0xe], 4294967280 }
  0xef   :  { %1190 = dma.done.wait [#allocation4 + $0x7], 16 }
  0xf0   :  { %1191 = vsyncadd [#allocation4 + $0x7], 4294967280 }
  0xf1   :  { %1192 = dma.done.wait [#allocation4 + $0xf], 16 }
  0xf2   :  { %1193 = vsyncadd [#allocation4 + $0xf], 4294967280  ;;  %vm355_vm0 = vcmask 261120   ;;  %v1214_v0 = vmov 0   ;;  %v351_v4 = vld [vmem:[#allocation2] sm:$0xff]  ;;  %v352_v5 = vld [vmem:[#allocation3] sm:$0xff]  ;;  %v521_v36 = vstv %s1432_s2 }
  0xf3   :  { %v357_v1 = vsel %vm355_vm0, 1.0, %v1214_v0  ;;  %v353_v6 = vsub.f32 %v351_v4, %v352_v5  ;;  %v1215_v16 = vmov 1.0   ;;  %s1216_s12 = smov [#allocation11]   ;;  %s532_s29 = sshll.u32 %s1434_s4, 4  ;;  %vm523_vm3 = vcmask 57344   ;;  %s533_s29 = int_to_ptr.hbm [resolvable:$true] %s532_s29 }
  0xf4   :  { %v380_v2 = vsub.f32 %v357_v1, %v357_v1  ;;  %s530_s14 = sshll.u32 %s1216_s12, 4  ;;  %s531_s14 = int_to_ptr.vmem [resolvable:$true] %s530_s14 }
  0xf5   :  { %v354_v7 = vmul.f32 %v353_v6, %v353_v6 }
  0xf6   :  { %v381_v3 = vand.u32 4294901760, %v380_v2 }
  0xf7   :  { %v360_v9 = vsel %vm355_vm0, %v354_v7, 0 }
  0xf8   :  { %v382_v8 = vsub.f32 %v380_v2, %v381_v3  ;;  %v377_v10 = vand.u32 4294901760, %v360_v9 }
  0xfa   :  { %v383_v11 = vand.u32 4294901760, %v382_v8  ;;  %v404_v12 = vsub.f32 %v360_v9, %v377_v10  ;;  %378 = vmatpush.xpose.msra.mxu0 %v377_v10  ;;  %454 = vmatpush.xpose.msra.mxu3 %v377_v10 }
  0xfc   :  { %431 = vmatpush.xpose.msra.mxu2 %v404_v12  ;;  %v405_v13 = vand.u32 4294901760, %v404_v12 }
  0xfd   :  { %384 = vmatmul.f32.vlgmr.msra.gmra.mxu0 %v383_v11  ;;  %458 = vmatmul.f32.vlgmr.msra.gmra.mxu3 %v381_v3 }
  0xfe   :  { %v406_v14 = vsub.f32 %v404_v12, %v405_v13  ;;  %480 = vmatpush.xpose.msrb.mxu0 %v405_v13 }
  0xff   :  { %434 = vmatmul.f32.vlgmr.msra.gmra.mxu2 %v380_v2 }
 0x100   :  { %v407_v15 = vand.u32 4294901760, %v406_v14 }
 0x102   :  { %408 = vmatpush.xpose.msra.mxu1 %v407_v15 }
 0x105   :  { %684 = vmatmul.msk.f32.vlgmr.msra.gmra.mxu1 %vm355_vm0, %v1215_v16  ;;  %685 = vmatmul.msk.f32.vlgmr.msrb.gmra.mxu0 %vm355_vm0, %v1215_v16 }
 0x106   :  { %502 = vmatpush.xpose.msrb.mxu1 %v377_v10 }
 0x10d   :  { %686 = vmatmul.msk.f32.vlgmr.msrb.gmra.mxu1 %vm355_vm0, %v1215_v16 }
 0x17a   :  { %v385_v17 = vpop.f32.mrf.mxu0 }
 0x180   :  { %v459_v21 = vpop.f32.mrf.mxu3 }
 0x182   :  { %v411_v18 = vpop.f32.mrf.mxu1  ;;  %v435_v19 = vpop.f32.mrf.mxu2 }
 0x183   :  { %v412_v20 = vadd.f32 %v411_v18, %v385_v17  ;;  %v483_v23 = vpop.f32.mrf.mxu0 }
 0x185   :  { %v436_v22 = vadd.f32 %v435_v19, %v412_v20 }
 0x187   :  { %v460_v24 = vadd.f32 %v459_v21, %v436_v22 }
 0x189   :  { %v484_v25 = vadd.f32 %v483_v23, %v460_v24 }
 0x18a   :  { %v505_v26 = vpop.f32.mrf.mxu1 }
 0x18b   :  { %v506_v27 = vadd.f32 %v505_v26, %v484_v25 }
 0x18d   :  { %724 = vrsqrt.f32 %v506_v27  ;;  %vm516_vm1 = vcmp.eq.f32.partialorder %v506_v27, inf  ;;  %v519_v35 = vand.u32 2147483648, %v506_v27  ;;  %vm518_vm2 = vcmp.eq.f32.partialorder %v506_v27, 0.0 }
 0x193   :  { %v725_v28 = vpop.eup %724 }
 0x194   :  { %v510_v29 = vmul.f32 %v725_v28, %v506_v27 }
 0x196   :  { %v511_v30 = vmul.f32 %v725_v28, %v510_v29 }
 0x198   :  { %v512_v31 = vmul.f32 0.5, %v511_v30 }
 0x19a   :  { %v513_v32 = vsub.f32 1.5, %v512_v31 }
 0x19c   :  { %v514_v33 = vmul.f32 %v725_v28, %v513_v32 }
 0x19e   :  { %v515_v34 = vmul.f32 %v514_v33, %v506_v27 }
 0x1a0   :  { %v517_v37 = vsel %vm516_vm1, %v506_v27, %v515_v34 }
 0x1a1   :  { %v520_v38 = vsel %vm518_vm2, %v519_v35, %v517_v37 }
 0x1a2   :  { %v522_v39 = vsub.f32 %v521_v36, %v520_v38 }
 0x1a4   :  { %524 = vst.msk [vmem:[#allocation11] sm:$0x1] %vm523_vm3, %v522_v39 }
 0x1a5   :  { %535 = dma.vmem_to_hbm [thread:$0]  %s531_s14, 16, %s533_s29, [#allocation7]  }
 0x1a6   :  { %1194 = dma.done.wait [#allocation7], 16  }
 0x1a7   :  { %1195 = vsyncadd [#allocation7], 4294967280 }
 0x1a8   :  { %540 = vsyncpa [#allocation7], 1 }
 0x1a9   :  { %541 = vsyncpa [#allocation8], 1 }
 0x1aa   :  { %542 = vsyncpa [#allocation10], 1 }
 0x1ab   :  { %543 = vsyncmov [#allocation4] }
 0x1ae   :  { %s544_s2 = vpop.sfrf %543 }
 0x1af   :  { %p687_p10 = scmp.ne.s32.totalorder %s544_s2, 0 }
 0x1b1   :  { %548 = shalt.err (%p687_p10)  }
 0x1b2   :  { %550 = vsyncmov [#allocation4 + $0x1] }
 0x1b5   :  { %s551_s4 = vpop.sfrf %550 }
 0x1b6   :  { %p688_p11 = scmp.ne.s32.totalorder %s551_s4, 0 }
 0x1b8   :  { %555 = shalt.err (%p688_p11)  }
 0x1b9   :  { %557 = vsyncmov [#allocation4 + $0x2] }
 0x1bc   :  { %s558_s18 = vpop.sfrf %557 }
 0x1bd   :  { %p689_p12 = scmp.ne.s32.totalorder %s558_s18, 0 }
 0x1bf   :  { %562 = shalt.err (%p689_p12)  }
 0x1c0   :  { %564 = vsyncmov [#allocation4 + $0x3] }
 0x1c3   :  { %s565_s19 = vpop.sfrf %564 }
 0x1c4   :  { %p690_p13 = scmp.ne.s32.totalorder %s565_s19, 0 }
 0x1c6   :  { %569 = shalt.err (%p690_p13)  }
 0x1c7   :  { %571 = vsyncmov [#allocation4 + $0x4] }
 0x1ca   :  { %s572_s13 = vpop.sfrf %571 }
 0x1cb   :  { %p691_p0 = scmp.ne.s32.totalorder %s572_s13, 0 }
 0x1cd   :  { %576 = shalt.err (%p691_p0)  }
 0x1ce   :  { %578 = vsyncmov [#allocation4 + $0x5] }
 0x1d1   :  { %s579_s21 = vpop.sfrf %578 }
 0x1d2   :  { %p692_p1 = scmp.ne.s32.totalorder %s579_s21, 0 }
 0x1d4   :  { %583 = shalt.err (%p692_p1)  }
 0x1d5   :  { %585 = vsyncmov [#allocation4 + $0x6] }
 0x1d8   :  { %s586_s22 = vpop.sfrf %585 }
 0x1d9   :  { %p693_p2 = scmp.ne.s32.totalorder %s586_s22, 0 }
 0x1db   :  { %590 = shalt.err (%p693_p2)  }
 0x1dc   :  { %592 = vsyncmov [#allocation4 + $0x7] }
 0x1df   :  { %s593_s23 = vpop.sfrf %592 }
 0x1e0   :  { %p694_p3 = scmp.ne.s32.totalorder %s593_s23, 0 }
 0x1e2   :  { %597 = shalt.err (%p694_p3)  }
 0x1e3   :  { %599 = vsyncmov [#allocation4 + $0x8] }
 0x1e6   :  { %s600_s24 = vpop.sfrf %599 }
 0x1e7   :  { %p695_p4 = scmp.ne.s32.totalorder %s600_s24, 0 }
 0x1e9   :  { %604 = shalt.err (%p695_p4)  }
 0x1ea   :  { %606 = vsyncmov [#allocation4 + $0x9] }
 0x1ed   :  { %s607_s26 = vpop.sfrf %606 }
 0x1ee   :  { %p696_p5 = scmp.ne.s32.totalorder %s607_s26, 0 }
 0x1f0   :  { %611 = shalt.err (%p696_p5)  }
 0x1f1   :  { %613 = vsyncmov [#allocation4 + $0xa] }
 0x1f4   :  { %s614_s20 = vpop.sfrf %613 }
 0x1f5   :  { %p697_p6 = scmp.ne.s32.totalorder %s614_s20, 0 }
 0x1f7   :  { %618 = shalt.err (%p697_p6)  }
 0x1f8   :  { %620 = vsyncmov [#allocation4 + $0xb] }
 0x1fb   :  { %s621_s28 = vpop.sfrf %620 }
 0x1fc   :  { %p698_p7 = scmp.ne.s32.totalorder %s621_s28, 0 }
 0x1fe   :  { %625 = shalt.err (%p698_p7)  }
 0x1ff   :  { %627 = vsyncmov [#allocation4 + $0xc] }
 0x202   :  { %s628_s1 = vpop.sfrf %627 }
 0x203   :  { %p699_p8 = scmp.ne.s32.totalorder %s628_s1, 0 }
 0x205   :  { %632 = shalt.err (%p699_p8)  }
 0x206   :  { %634 = vsyncmov [#allocation4 + $0xd] }
 0x209   :  { %s635_s5 = vpop.sfrf %634 }
 0x20a   :  { %p700_p9 = scmp.ne.s32.totalorder %s635_s5, 0 }
 0x20c   :  { %639 = shalt.err (%p700_p9)  }
 0x20d   :  { %641 = vsyncmov [#allocation4 + $0xe] }
 0x210   :  { %s642_s6 = vpop.sfrf %641 }
 0x211   :  { %p701_p10 = scmp.ne.s32.totalorder %s642_s6, 0 }
 0x213   :  { %646 = shalt.err (%p701_p10)  }
 0x214   :  { %648 = vsyncmov [#allocation4 + $0xf] }
 0x217   :  { %s649_s7 = vpop.sfrf %648 }
 0x218   :  { %p702_p11 = scmp.ne.s32.totalorder %s649_s7, 0 }
 0x21a   :  { %653 = shalt.err (%p702_p11)  }

</bundles_post_ra>
